<compile_context>
chip_gen: v6e
topology: v6e:2x2x1
jax: 0.10.0
libtpu: 0.0.40
codegen_flags: <defaults>
</compile_context>

<pallas_src>
import functools

import numpy as np
import jax
import jax.numpy as jnp
from jax import lax
from jax.experimental import pallas as pl
from jax.experimental.pallas import tpu as pltpu

EPS = 1e-5


def _pad_width(W):
    # >= W + 1 (at least one guaranteed-zero column on the right for the 3x3
    # right tap / roll wraparound) and a multiple of 8 (sublane aligned).
    return ((W + 1 + 7) // 8) * 8


def bottleneck_kernel(xc_ref, xt_ref, xb_ref,
                      w1_ref, s1_ref, b1_ref,
                      w2_ref, s2_ref, b2_ref,
                      w3_ref, s3_ref, b3_ref,
                      o_ref, *, true_w):
    # xc_ref: (1, TH, Wp, Cin)   center row-tile of right-padded input
    # xt_ref: (1, 1,  Wp, Cin)   row above the tile (clamped at image top)
    # xb_ref: (1, 1,  Wp, Cin)   row below the tile (clamped at image bottom)
    # w1_ref: (Cin, Cmid)        bf16, 1x1 conv as matmul
    # w2_ref: (9*Cmid, Cmid)     bf16, 3x3 conv taps flattened (ky, kx, ci)
    # w3_ref: (Cmid, Cout)       bf16, 1x1 conv as matmul
    # s*/b*:  (1, C)             f32 folded BN scale / bias
    # o_ref:  (1, TH, Wp, Cout)  (padded columns sliced off in the wrapper)
    f32 = jnp.float32
    bf16 = jnp.bfloat16
    _, TH, Wp, Cin = xc_ref.shape
    Cmid = w1_ref.shape[1]
    Cout = o_ref.shape[3]
    W = true_w
    n_rows = (TH + 2) * Wp

    xc = xc_ref[...].reshape(TH, Wp, Cin)      # center tile (also the residual)
    xt = xt_ref[...].reshape(1, Wp, Cin)       # halo row above
    xb = xb_ref[...].reshape(1, Wp, Cin)       # halo row below

    # ---- conv1 (1x1) + bn1 + relu: ONE MXU push for tile + both halo rows ----
    x_all = jnp.concatenate([xt, xc, xb], axis=0).reshape(n_rows, Cin)
    h1 = jnp.dot(x_all.astype(bf16), w1_ref[...], preferred_element_type=f32)
    h1 = jnp.maximum(h1 * s1_ref[...] + b1_ref[...], 0.0)

    # Zero the W-padding columns (conv1 of zero input is relu(b1); must be 0
    # both for 'same' padding and for the roll wraparound below).
    h1p = h1.reshape(TH + 2, Wp, Cmid)
    col = lax.broadcasted_iota(jnp.int32, h1p.shape, 1)
    h1p = jnp.where(col < W, h1p, 0.0)
    h1f = h1p.reshape(n_rows, Cmid)

    # Zero the halo rows at the image top / bottom boundaries.
    j = pl.program_id(1)
    last = pl.num_programs(1) - 1
    k = lax.broadcasted_iota(jnp.int32, h1f.shape, 0)
    valid = ((k >= Wp) | (j > 0)) & ((k < (TH + 1) * Wp) | (j < last))
    h1f = jnp.where(valid, h1f, 0.0)

    # ---- conv2 (3x3, stride=1, 'same') + bn2 + relu: one fused-K matmul ----
    # Column taps via XLU sublane rotations of the flattened (row*Wp) axis;
    # the wrapped-in elements are the guaranteed-zero padding columns, so the
    # result is exact and every window slice below is sublane-aligned.
    left = pltpu.roll(h1f, shift=1, axis=0)              # input column x-1
    right = pltpu.roll(h1f, shift=n_rows - 1, axis=0)    # input column x+1
    shifted = (left, h1f, right)                         # kx = 0, 1, 2
    taps = [shifted[kx][ky * Wp:ky * Wp + TH * Wp, :]
            for ky in range(3) for kx in range(3)]
    patches = jnp.concatenate(taps, axis=-1)             # (TH*Wp, 9*Cmid)
    # TODO(synk): on v7x (64 MiB VMEM, MRB accumulation) split this into 3
    #             accumulated K=3*Cmid matmuls instead of the 9x im2col buffer.
    h2 = jnp.dot(patches.astype(bf16), w2_ref[...], preferred_element_type=f32)
    h2 = jnp.maximum(h2 * s2_ref[...] + b2_ref[...], 0.0)

    # ---- conv3 (1x1) + bn3 + residual add + relu (epilogue all in f32) ----
    h3 = jnp.dot(h2.astype(bf16), w3_ref[...], preferred_element_type=f32)
    h3 = h3 * s3_ref[...] + b3_ref[...]
    identity = xc.reshape(TH * Wp, Cin)                  # aligned view, no offset slice
    out = jnp.maximum(h3 + identity, 0.0)

    o_ref[...] = out.reshape(1, TH, Wp, Cout).astype(o_ref.dtype)


def _vmem_capacity_bytes():
    try:
        cap = int(pltpu.get_tpu_info().vmem_capacity_bytes)
        if cap >= (16 << 20):
            return cap
    except Exception:
        pass
    return 64 << 20            # conservative fallback: v7x per-TensorCore VMEM


def _pick_row_tile(N, H, W, Cin, Cmid, Cout, vmem_bytes):
    """Largest divisor TH of H whose per-step working set (double-buffered
    x/output tiles + conv2 intermediates + single-buffered bf16 weights) fits
    ~55% of this generation's VMEM, while keeping >= 2 (preferably even) grid
    steps so both v7x TensorCores get work."""
    Wp = _pad_width(W)
    f32b, bf16b = 4, 2
    budget = int(0.55 * vmem_bytes)
    fixed = (bf16b * (Cin * Cmid + 9 * Cmid * Cmid + Cmid * Cout)   # weights, 1x buffered
             + f32b * 2 * (2 * Cmid + Cout)                         # scale / bias
             + f32b * 2 * 2 * Wp * Cin)                             # halo rows, 2x buffered
    per_row = Wp * (
        f32b * (2 * Cin          # x tile (double buffered)
                + 2 * Cout       # output tile (double buffered)
                + Cin            # x_all concat copy
                + 2 * Cmid       # h1 / h2 f32
                + 9 * Cmid       # im2col patches (f32 before the bf16 cast)
                + 2 * Cout)      # h3 / out temporaries
        + bf16b * (11 * Cmid))   # bf16 matmul-operand copies
    cap = max(1, (budget - fixed) // per_row)
    divisors = [d for d in range(1, H + 1) if H % d == 0]
    fitting = [d for d in divisors if d <= cap] or [1]
    multi = [d for d in fitting if N * (H // d) >= 2] or fitting
    even = [d for d in multi if (N * (H // d)) % 2 == 0] or multi
    return max(even)


def bottleneck_forward_nhwc(x, params, row_tile=None):
    """x: (N, H, W, Cin) float32 NHWC.  Returns (N, H, W, Cout)."""
    w1, s1, b1, w2, s2, b2, w3, s3, b3 = params
    N, H, W, Cin = x.shape
    Cmid = w1.shape[1]
    Cout = w3.shape[1]
    # stride=1 / downsample=None => identity residual requires Cin == Cout.
    assert Cin == Cout, "Bottleneck identity path needs in_channels == out_channels*4"

    vmem_cap = _vmem_capacity_bytes()
    TH = row_tile if row_tile is not None else _pick_row_tile(
        N, H, W, Cin, Cmid, Cout, vmem_cap)
    assert H % TH == 0, "row_tile must divide H"
    n_row_tiles = H // TH

    # Pad W once in HBM: zeros on the RIGHT only, up to a multiple of 8
    # (>= W+1).  Real data starts at column 0 -> the residual add is a free
    # aligned view, and all in-kernel reshapes / stores stay tile-aligned.
    Wp = _pad_width(W)
    xp = jnp.pad(x, ((0, 0), (0, 0), (0, Wp - W), (0, 0)))

    # bf16 MXU operands: halves weight DMA + VMEM and uses the native MXU
    # datapath.  BN scale/bias stay f32 (epilogue math on the VPU in f32).
    w1b = w1.astype(jnp.bfloat16)
    w2b = w2.reshape(9 * Cmid, Cmid).astype(jnp.bfloat16)   # (ky, kx, ci) tap order
    w3b = w3.astype(jnp.bfloat16)

    def center_map(n, j):
        return (n, j, 0, 0)

    def top_map(n, j):
        return (n, jnp.maximum(j * TH - 1, 0), 0, 0)

    def bot_map(n, j):
        return (n, jnp.minimum(j * TH + TH, H - 1), 0, 0)

    def const_map(n, j):
        return (0, 0)

    # Constant operands: VMEM-resident and single-buffered (no wasted second
    # pipeline buffer — matters most inside v7x's 64 MiB VMEM).
    def const_spec(shape):
        return pl.BlockSpec(shape, const_map, pipeline_mode=pl.Buffered(1))

    grid_spec = pltpu.PrefetchScalarGridSpec(
        num_scalar_prefetch=0,
        grid=(N, n_row_tiles),
        in_specs=[
            pl.BlockSpec((1, TH, Wp, Cin), center_map),   # x tile (conv1 + residual)
            pl.BlockSpec((1, 1, Wp, Cin), top_map),       # top halo row
            pl.BlockSpec((1, 1, Wp, Cin), bot_map),       # bottom halo row
            const_spec((Cin, Cmid)),                      # w1 (bf16)
            const_spec((1, Cmid)),                        # s1
            const_spec((1, Cmid)),                        # b1
            const_spec((9 * Cmid, Cmid)),                 # w2 (bf16, fused taps)
            const_spec((1, Cmid)),                        # s2
            const_spec((1, Cmid)),                        # b2
            const_spec((Cmid, Cout)),                     # w3 (bf16)
            const_spec((1, Cout)),                        # s3
            const_spec((1, Cout)),                        # b3
        ],
        out_specs=pl.BlockSpec((1, TH, Wp, Cout), center_map),
    )

    # TODO(synk): for Cout < 128 the output store path is lane-sparse
    #             (vst.msk); real ResNet stages (Cout >= 256) are the target.
    out = pl.pallas_call(
        functools.partial(bottleneck_kernel, true_w=W),
        out_shape=jax.ShapeDtypeStruct((N, H, Wp, Cout), jnp.float32),
        grid_spec=grid_spec,
        compiler_params=pltpu.CompilerParams(
            dimension_semantics=("parallel", "parallel"),
            vmem_limit_bytes=max(32 << 20, min(int(0.75 * vmem_cap), 96 << 20))),
    )(xp, xp, xp, w1b, s1, b1, w2b, s2, b2, w3b, s3, b3)

    return out[:, :, :W, :]


def bottleneck_forward(x_nchw, params, row_tile=None):
    """PyTorch-layout wrapper.  In a full model keep everything NHWC and call
    bottleneck_forward_nhwc directly (avoids the two transpose round trips)."""
    x = jnp.transpose(x_nchw, (0, 2, 3, 1))          # NCHW -> NHWC
    out = bottleneck_forward_nhwc(x, params, row_tile=row_tile)
    return jnp.transpose(out, (0, 3, 1, 2))          # NHWC -> NCHW


def fold_bn(gamma, beta, mean, var):
    scale = gamma / jnp.sqrt(var + EPS)
    bias = beta - mean * scale
    return scale[None, :], bias[None, :]             # (1, C)


def make_params(key, cin, cmid, cout):
    ks = jax.random.split(key, 15)
    # Conv weights generated directly in the matmul / HWIO layouts used above.
    w1 = jax.random.normal(ks[0], (cin, cmid), jnp.float32) * 0.1
    w2 = jax.random.normal(ks[1], (3, 3, cmid, cmid), jnp.float32) * 0.1
    w3 = jax.random.normal(ks[2], (cmid, cout), jnp.float32) * 0.1
    bn = []
    for i, c in enumerate((cmid, cmid, cout)):
        gamma = 1.0 + 0.1 * jax.random.normal(ks[3 + 4 * i], (c,), jnp.float32)
        beta = 0.1 * jax.random.normal(ks[4 + 4 * i], (c,), jnp.float32)
        mean = 0.1 * jax.random.normal(ks[5 + 4 * i], (c,), jnp.float32)
        var = jnp.abs(jax.random.normal(ks[6 + 4 * i], (c,), jnp.float32)) + 0.5
        bn.append(fold_bn(gamma, beta, mean, var))
    (s1, b1), (s2, b2), (s3, b3) = bn
    return (w1, s1, b1, w2, s2, b2, w3, s3, b3)


def reference_forward(x_nchw, params):
    """Pure-JAX f32 reference (same math) for validation."""
    w1, s1, b1, w2, s2, b2, w3, s3, b3 = params
    x = jnp.transpose(x_nchw, (0, 2, 3, 1))
    h1 = jnp.maximum(jnp.einsum('nhwc,cd->nhwd', x, w1) * s1 + b1, 0.0)
    h2 = lax.conv_general_dilated(
        h1, w2, window_strides=(1, 1), padding=((1, 1), (1, 1)),
        dimension_numbers=('NHWC', 'HWIO', 'NHWC'))
    h2 = jnp.maximum(h2 * s2 + b2, 0.0)
    h3 = jnp.einsum('nhwc,cd->nhwd', h2, w3) * s3 + b3
    out = jnp.maximum(h3 + x, 0.0)
    return jnp.transpose(out, (0, 3, 1, 2))


if __name__ == "__main__":
    key = jax.random.PRNGKey(0)
    kx, kp = jax.random.split(key)

    # Bottleneck with out_channels=4, expansion=4 -> in_channels = 16.
    N, Cin, H, W = 2, 16, 16, 16
    Cmid = 4
    Cout = Cmid * 4  # == Cin so the identity add is valid (downsample=None)

    x = jax.random.normal(kx, (N, Cin, H, W), jnp.float32)
    params = make_params(kp, Cin, Cmid, Cout)

    ref = jax.block_until_ready(reference_forward(x, params))

    # bf16 MXU operands vs f32 reference -> loosened tolerance.
    TOL = 5e-2

    # Multi-tile grid (exercises the H-halo / roll path: grid = (2, 4)).
    out = jax.block_until_ready(bottleneck_forward(x, params, row_tile=4))
    np.testing.assert_allclose(np.asarray(out), np.asarray(ref),
                               rtol=TOL, atol=TOL)

    # Auto-picked tile size (grid = (2, 1); >= 2 steps kept for megacore).
    out2 = jax.block_until_ready(bottleneck_forward(x, params))
    np.testing.assert_allclose(np.asarray(out2), np.asarray(ref),
                               rtol=TOL, atol=TOL)

    print("KERNEL_OK")
</pallas_src>

<mosaic_0001>
module attributes {stable_mosaic.version = 11 : i64} {
  func.func @bottleneck_kernel(%arg0: i32, %arg1: i32, %arg2: memref<1x4x24x16xf32, #tpu.memory_space<vmem>>, %arg3: memref<1x1x24x16xf32, #tpu.memory_space<vmem>>, %arg4: memref<1x1x24x16xf32, #tpu.memory_space<vmem>>, %arg5: memref<16x4xbf16, #tpu.memory_space<vmem>>, %arg6: memref<1x4xf32, #tpu.memory_space<vmem>>, %arg7: memref<1x4xf32, #tpu.memory_space<vmem>>, %arg8: memref<36x4xbf16, #tpu.memory_space<vmem>>, %arg9: memref<1x4xf32, #tpu.memory_space<vmem>>, %arg10: memref<1x4xf32, #tpu.memory_space<vmem>>, %arg11: memref<4x16xbf16, #tpu.memory_space<vmem>>, %arg12: memref<1x16xf32, #tpu.memory_space<vmem>>, %arg13: memref<1x16xf32, #tpu.memory_space<vmem>>, %arg14: memref<1x4x24x16xf32, #tpu.memory_space<vmem>>) attributes {dimension_semantics = [#tpu.dimension_semantics<parallel>, #tpu.dimension_semantics<parallel>], iteration_bounds = array<i64: 2, 4>, scalar_prefetch = 0 : i64, scratch_operands = 0 : i64, tpu.core_type = #tpu.core_type<tc>, window_params = [{transform_indices = @transform_0, window_bounds = array<i64: 1, 4, 24, 16>}, {transform_indices = @transform_1, window_bounds = array<i64: 1, 1, 24, 16>}, {transform_indices = @transform_2, window_bounds = array<i64: 1, 1, 24, 16>}, {pipeline_mode = #tpu.pipeline_mode<synchronous>, transform_indices = @transform_3, window_bounds = array<i64: 16, 4>}, {pipeline_mode = #tpu.pipeline_mode<synchronous>, transform_indices = @transform_4, window_bounds = array<i64: 1, 4>}, {pipeline_mode = #tpu.pipeline_mode<synchronous>, transform_indices = @transform_5, window_bounds = array<i64: 1, 4>}, {pipeline_mode = #tpu.pipeline_mode<synchronous>, transform_indices = @transform_6, window_bounds = array<i64: 36, 4>}, {pipeline_mode = #tpu.pipeline_mode<synchronous>, transform_indices = @transform_7, window_bounds = array<i64: 1, 4>}, {pipeline_mode = #tpu.pipeline_mode<synchronous>, transform_indices = @transform_8, window_bounds = array<i64: 1, 4>}, {pipeline_mode = #tpu.pipeline_mode<synchronous>, transform_indices = @transform_9, window_bounds = array<i64: 4, 16>}, {pipeline_mode = #tpu.pipeline_mode<synchronous>, transform_indices = @transform_10, window_bounds = array<i64: 1, 16>}, {pipeline_mode = #tpu.pipeline_mode<synchronous>, transform_indices = @transform_11, window_bounds = array<i64: 1, 16>}, {transform_indices = @transform_12, window_bounds = array<i64: 1, 4, 24, 16>}]} {
    %c0 = arith.constant 0 : index
    %c0_0 = arith.constant 0 : index
    %c0_1 = arith.constant 0 : index
    %c0_2 = arith.constant 0 : index
    %0 = vector.load %arg2[%c0, %c0_0, %c0_1, %c0_2] : memref<1x4x24x16xf32, #tpu.memory_space<vmem>>, vector<1x4x24x16xf32>
    %1 = vector.shape_cast %0 : vector<1x4x24x16xf32> to vector<4x24x16xf32>
    %c0_3 = arith.constant 0 : index
    %c0_4 = arith.constant 0 : index
    %c0_5 = arith.constant 0 : index
    %c0_6 = arith.constant 0 : index
    %2 = vector.load %arg3[%c0_3, %c0_4, %c0_5, %c0_6] : memref<1x1x24x16xf32, #tpu.memory_space<vmem>>, vector<1x1x24x16xf32>
    %3 = vector.shape_cast %2 : vector<1x1x24x16xf32> to vector<1x24x16xf32>
    %c0_7 = arith.constant 0 : index
    %c0_8 = arith.constant 0 : index
    %c0_9 = arith.constant 0 : index
    %c0_10 = arith.constant 0 : index
    %4 = vector.load %arg4[%c0_7, %c0_8, %c0_9, %c0_10] : memref<1x1x24x16xf32, #tpu.memory_space<vmem>>, vector<1x1x24x16xf32>
    %5 = vector.shape_cast %4 : vector<1x1x24x16xf32> to vector<1x24x16xf32>
    %6 = tpu.concatenate %3, %1, %5 in 0 : vector<1x24x16xf32>, vector<4x24x16xf32>, vector<1x24x16xf32> -> vector<6x24x16xf32>
    %7 = vector.shape_cast %6 : vector<6x24x16xf32> to vector<144x16xf32>
    %8 = arith.truncf %7 : vector<144x16xf32> to vector<144x16xbf16>
    %c0_11 = arith.constant 0 : index
    %c0_12 = arith.constant 0 : index
    %9 = vector.load %arg5[%c0_11, %c0_12] : memref<16x4xbf16, #tpu.memory_space<vmem>>, vector<16x4xbf16>
    %cst = arith.constant dense<0.000000e+00> : vector<144x4xf32>
    %10 = tpu.matmul %8, %9, %cst {dimension_numbers = #tpu.dot_dimension_numbers<[1], [0], [0], [1], [0, 0, 1, 1], [], []>} : vector<144x16xbf16>, vector<16x4xbf16>, vector<144x4xf32> -> vector<144x4xf32>
    %c0_13 = arith.constant 0 : index
    %c0_14 = arith.constant 0 : index
    %11 = vector.load %arg6[%c0_13, %c0_14] : memref<1x4xf32, #tpu.memory_space<vmem>>, vector<1x4xf32>
    %12 = vector.broadcast %11 : vector<1x4xf32> to vector<144x4xf32>
    %13 = arith.mulf %10, %12 : vector<144x4xf32>
    %c0_15 = arith.constant 0 : index
    %c0_16 = arith.constant 0 : index
    %14 = vector.load %arg7[%c0_15, %c0_16] : memref<1x4xf32, #tpu.memory_space<vmem>>, vector<1x4xf32>
    %15 = vector.broadcast %14 : vector<1x4xf32> to vector<144x4xf32>
    %16 = arith.addf %13, %15 : vector<144x4xf32>
    %cst_17 = arith.constant 0.000000e+00 : f32
    %17 = vector.broadcast %cst_17 : f32 to vector<144x4xf32>
    %18 = arith.maximumf %16, %17 : vector<144x4xf32>
    %19 = vector.shape_cast %18 : vector<144x4xf32> to vector<6x24x4xf32>
    %20 = tpu.iota {dimensions = array<i32: 1>} : vector<6x24x4xi32>
    %c16_i32 = arith.constant 16 : i32
    %21 = vector.broadcast %c16_i32 : i32 to vector<6x24x4xi32>
    %22 = arith.cmpi slt, %20, %21 : vector<6x24x4xi32>
    %cst_18 = arith.constant 0.000000e+00 : f32
    %23 = vector.broadcast %cst_18 : f32 to vector<6x24x4xf32>
    %24 = arith.select %22, %19, %23 : vector<6x24x4xi1>, vector<6x24x4xf32>
    %25 = vector.shape_cast %24 : vector<6x24x4xf32> to vector<144x4xf32>
    %26 = tpu.iota {dimensions = array<i32: 0>} : vector<144x4xi32>
    %c24_i32 = arith.constant 24 : i32
    %27 = vector.broadcast %c24_i32 : i32 to vector<144x4xi32>
    %28 = arith.cmpi sge, %26, %27 : vector<144x4xi32>
    %c0_i32 = arith.constant 0 : i32
    %29 = arith.cmpi sgt, %arg1, %c0_i32 : i32
    %30 = vector.broadcast %29 : i1 to vector<144x4xi1>
    %31 = arith.ori %28, %30 : vector<144x4xi1>
    %c120_i32 = arith.constant 120 : i32
    %32 = vector.broadcast %c120_i32 : i32 to vector<144x4xi32>
    %33 = arith.cmpi slt, %26, %32 : vector<144x4xi32>
    %c3_i32 = arith.constant 3 : i32
    %34 = arith.cmpi slt, %arg1, %c3_i32 : i32
    %35 = vector.broadcast %34 : i1 to vector<144x4xi1>
    %36 = arith.ori %33, %35 : vector<144x4xi1>
    %37 = arith.andi %31, %36 : vector<144x4xi1>
    %cst_19 = arith.constant 0.000000e+00 : f32
    %38 = vector.broadcast %cst_19 : f32 to vector<144x4xf32>
    %39 = arith.select %37, %25, %38 : vector<144x4xi1>, vector<144x4xf32>
    %c1_i32 = arith.constant 1 : i32
    %40 = tpu.dynamic_rotate %39 by %c1_i32 dim 0 : vector<144x4xf32>, i32 -> vector<144x4xf32>
    %c143_i32 = arith.constant 143 : i32
    %41 = tpu.dynamic_rotate %39 by %c143_i32 dim 0 : vector<144x4xf32>, i32 -> vector<144x4xf32>
    %42 = vector.extract_strided_slice %40 {offsets = [0, 0], sizes = [96, 4], strides = [1, 1]} : vector<144x4xf32> to vector<96x4xf32>
    %43 = vector.extract_strided_slice %39 {offsets = [0, 0], sizes = [96, 4], strides = [1, 1]} : vector<144x4xf32> to vector<96x4xf32>
    %44 = vector.extract_strided_slice %41 {offsets = [0, 0], sizes = [96, 4], strides = [1, 1]} : vector<144x4xf32> to vector<96x4xf32>
    %45 = vector.extract_strided_slice %40 {offsets = [24, 0], sizes = [96, 4], strides = [1, 1]} : vector<144x4xf32> to vector<96x4xf32>
    %46 = vector.extract_strided_slice %39 {offsets = [24, 0], sizes = [96, 4], strides = [1, 1]} : vector<144x4xf32> to vector<96x4xf32>
    %47 = vector.extract_strided_slice %41 {offsets = [24, 0], sizes = [96, 4], strides = [1, 1]} : vector<144x4xf32> to vector<96x4xf32>
    %48 = vector.extract_strided_slice %40 {offsets = [48, 0], sizes = [96, 4], strides = [1, 1]} : vector<144x4xf32> to vector<96x4xf32>
    %49 = vector.extract_strided_slice %39 {offsets = [48, 0], sizes = [96, 4], strides = [1, 1]} : vector<144x4xf32> to vector<96x4xf32>
    %50 = vector.extract_strided_slice %41 {offsets = [48, 0], sizes = [96, 4], strides = [1, 1]} : vector<144x4xf32> to vector<96x4xf32>
    %51 = tpu.concatenate %42, %43, %44, %45, %46, %47, %48, %49, %50 in 1 : vector<96x4xf32>, vector<96x4xf32>, vector<96x4xf32>, vector<96x4xf32>, vector<96x4xf32>, vector<96x4xf32>, vector<96x4xf32>, vector<96x4xf32>, vector<96x4xf32> -> vector<96x36xf32>
    %52 = arith.truncf %51 : vector<96x36xf32> to vector<96x36xbf16>
    %c0_20 = arith.constant 0 : index
    %c0_21 = arith.constant 0 : index
    %53 = vector.load %arg8[%c0_20, %c0_21] : memref<36x4xbf16, #tpu.memory_space<vmem>>, vector<36x4xbf16>
    %cst_22 = arith.constant dense<0.000000e+00> : vector<96x4xf32>
    %54 = tpu.matmul %52, %53, %cst_22 {dimension_numbers = #tpu.dot_dimension_numbers<[1], [0], [0], [1], [0, 0, 1, 1], [], []>} : vector<96x36xbf16>, vector<36x4xbf16>, vector<96x4xf32> -> vector<96x4xf32>
    %c0_23 = arith.constant 0 : index
    %c0_24 = arith.constant 0 : index
    %55 = vector.load %arg9[%c0_23, %c0_24] : memref<1x4xf32, #tpu.memory_space<vmem>>, vector<1x4xf32>
    %56 = vector.broadcast %55 : vector<1x4xf32> to vector<96x4xf32>
    %57 = arith.mulf %54, %56 : vector<96x4xf32>
    %c0_25 = arith.constant 0 : index
    %c0_26 = arith.constant 0 : index
    %58 = vector.load %arg10[%c0_25, %c0_26] : memref<1x4xf32, #tpu.memory_space<vmem>>, vector<1x4xf32>
    %59 = vector.broadcast %58 : vector<1x4xf32> to vector<96x4xf32>
    %60 = arith.addf %57, %59 : vector<96x4xf32>
    %cst_27 = arith.constant 0.000000e+00 : f32
    %61 = vector.broadcast %cst_27 : f32 to vector<96x4xf32>
    %62 = arith.maximumf %60, %61 : vector<96x4xf32>
    %63 = arith.truncf %62 : vector<96x4xf32> to vector<96x4xbf16>
    %c0_28 = arith.constant 0 : index
    %c0_29 = arith.constant 0 : index
    %64 = vector.load %arg11[%c0_28, %c0_29] : memref<4x16xbf16, #tpu.memory_space<vmem>>, vector<4x16xbf16>
    %cst_30 = arith.constant dense<0.000000e+00> : vector<96x16xf32>
    %65 = tpu.matmul %63, %64, %cst_30 {dimension_numbers = #tpu.dot_dimension_numbers<[1], [0], [0], [1], [0, 0, 1, 1], [], []>} : vector<96x4xbf16>, vector<4x16xbf16>, vector<96x16xf32> -> vector<96x16xf32>
    %c0_31 = arith.constant 0 : index
    %c0_32 = arith.constant 0 : index
    %66 = vector.load %arg12[%c0_31, %c0_32] : memref<1x16xf32, #tpu.memory_space<vmem>>, vector<1x16xf32>
    %67 = vector.broadcast %66 : vector<1x16xf32> to vector<96x16xf32>
    %68 = arith.mulf %65, %67 : vector<96x16xf32>
    %c0_33 = arith.constant 0 : index
    %c0_34 = arith.constant 0 : index
    %69 = vector.load %arg13[%c0_33, %c0_34] : memref<1x16xf32, #tpu.memory_space<vmem>>, vector<1x16xf32>
    %70 = vector.broadcast %69 : vector<1x16xf32> to vector<96x16xf32>
    %71 = arith.addf %68, %70 : vector<96x16xf32>
    %72 = vector.shape_cast %1 : vector<4x24x16xf32> to vector<96x16xf32>
    %73 = arith.addf %71, %72 : vector<96x16xf32>
    %cst_35 = arith.constant 0.000000e+00 : f32
    %74 = vector.broadcast %cst_35 : f32 to vector<96x16xf32>
    %75 = arith.maximumf %73, %74 : vector<96x16xf32>
    %76 = vector.shape_cast %75 : vector<96x16xf32> to vector<1x4x24x16xf32>
    %c0_36 = arith.constant 0 : index
    %c0_37 = arith.constant 0 : index
    %c0_38 = arith.constant 0 : index
    %c0_39 = arith.constant 0 : index
    %77 = vector.load %arg14[%c0_36, %c0_37, %c0_38, %c0_39] : memref<1x4x24x16xf32, #tpu.memory_space<vmem>>, vector<1x4x24x16xf32>
    tpu.vector_store %arg14[%c0_36, %c0_37, %c0_38, %c0_39], %76 {strides = array<i32>} : memref<1x4x24x16xf32, #tpu.memory_space<vmem>>, vector<1x4x24x16xf32>,
    return
  }
  func.func @transform_0(%arg0: i32, %arg1: i32) -> (i32, i32, i32, i32) {
    %c0_i32 = arith.constant 0 : i32
    %c0_i32_0 = arith.constant 0 : i32
    %c0_i32_1 = arith.constant 0 : i32
    return %arg0, %arg1, %c0_i32, %c0_i32_0 : i32, i32, i32, i32
  }
  func.func @transform_1(%arg0: i32, %arg1: i32) -> (i32, i32, i32, i32) {
    %c4_i32 = arith.constant 4 : i32
    %0 = arith.muli %arg1, %c4_i32 : i32
    %c1_i32 = arith.constant 1 : i32
    %1 = arith.subi %0, %c1_i32 : i32
    %c0_i32 = arith.constant 0 : i32
    %2 = arith.maxsi %1, %c0_i32 : i32
    %c0_i32_0 = arith.constant 0 : i32
    %c0_i32_1 = arith.constant 0 : i32
    %c0_i32_2 = arith.constant 0 : i32
    return %arg0, %2, %c0_i32_0, %c0_i32_1 : i32, i32, i32, i32
  }
  func.func @transform_2(%arg0: i32, %arg1: i32) -> (i32, i32, i32, i32) {
    %c4_i32 = arith.constant 4 : i32
    %0 = arith.muli %arg1, %c4_i32 : i32
    %c4_i32_0 = arith.constant 4 : i32
    %1 = arith.addi %0, %c4_i32_0 : i32
    %c15_i32 = arith.constant 15 : i32
    %2 = arith.minsi %1, %c15_i32 : i32
    %c0_i32 = arith.constant 0 : i32
    %c0_i32_1 = arith.constant 0 : i32
    %c0_i32_2 = arith.constant 0 : i32
    return %arg0, %2, %c0_i32, %c0_i32_1 : i32, i32, i32, i32
  }
  func.func @transform_3(%arg0: i32, %arg1: i32) -> (i32, i32) {
    %c0_i32 = arith.constant 0 : i32
    %c0_i32_0 = arith.constant 0 : i32
    %c0_i32_1 = arith.constant 0 : i32
    return %c0_i32, %c0_i32_0 : i32, i32
  }
  func.func @transform_4(%arg0: i32, %arg1: i32) -> (i32, i32) {
    %c0_i32 = arith.constant 0 : i32
    %c0_i32_0 = arith.constant 0 : i32
    %c0_i32_1 = arith.constant 0 : i32
    return %c0_i32, %c0_i32_0 : i32, i32
  }
  func.func @transform_5(%arg0: i32, %arg1: i32) -> (i32, i32) {
    %c0_i32 = arith.constant 0 : i32
    %c0_i32_0 = arith.constant 0 : i32
    %c0_i32_1 = arith.constant 0 : i32
    return %c0_i32, %c0_i32_0 : i32, i32
  }
  func.func @transform_6(%arg0: i32, %arg1: i32) -> (i32, i32) {
    %c0_i32 = arith.constant 0 : i32
    %c0_i32_0 = arith.constant 0 : i32
    %c0_i32_1 = arith.constant 0 : i32
    return %c0_i32, %c0_i32_0 : i32, i32
  }
  func.func @transform_7(%arg0: i32, %arg1: i32) -> (i32, i32) {
    %c0_i32 = arith.constant 0 : i32
    %c0_i32_0 = arith.constant 0 : i32
    %c0_i32_1 = arith.constant 0 : i32
    return %c0_i32, %c0_i32_0 : i32, i32
  }
  func.func @transform_8(%arg0: i32, %arg1: i32) -> (i32, i32) {
    %c0_i32 = arith.constant 0 : i32
    %c0_i32_0 = arith.constant 0 : i32
    %c0_i32_1 = arith.constant 0 : i32
    return %c0_i32, %c0_i32_0 : i32, i32
  }
  func.func @transform_9(%arg0: i32, %arg1: i32) -> (i32, i32) {
    %c0_i32 = arith.constant 0 : i32
    %c0_i32_0 = arith.constant 0 : i32
    %c0_i32_1 = arith.constant 0 : i32
    return %c0_i32, %c0_i32_0 : i32, i32
  }
  func.func @transform_10(%arg0: i32, %arg1: i32) -> (i32, i32) {
    %c0_i32 = arith.constant 0 : i32
    %c0_i32_0 = arith.constant 0 : i32
    %c0_i32_1 = arith.constant 0 : i32
    return %c0_i32, %c0_i32_0 : i32, i32
  }
  func.func @transform_11(%arg0: i32, %arg1: i32) -> (i32, i32) {
    %c0_i32 = arith.constant 0 : i32
    %c0_i32_0 = arith.constant 0 : i32
    %c0_i32_1 = arith.constant 0 : i32
    return %c0_i32, %c0_i32_0 : i32, i32
  }
  func.func @transform_12(%arg0: i32, %arg1: i32) -> (i32, i32, i32, i32) {
    %c0_i32 = arith.constant 0 : i32
    %c0_i32_0 = arith.constant 0 : i32
    %c0_i32_1 = arith.constant 0 : i32
    return %arg0, %arg1, %c0_i32, %c0_i32_0 : i32, i32, i32, i32
  }
}

</mosaic_0001>

<bundles_post_ra>
// kernel: tpu_custom_call.1
= control target key start
LH: loop header
LB: loop body
LE: loop exit
PB: predicated region body
PF: predicated region fallthrough
CT: control target
= control target key end

     0   :  { %s2583_s21 = smov 0   ;;  %s2585_s22 = smov 0   ;;  %s3301_s0 = inlined_call_operand.vmem [shape: f32[2,16,24,16], index: 0, kind: input, shape index: {}]   ;;  %s3302_s1 = inlined_call_operand.vmem [shape: f32[2,16,24,16], index: 1, kind: input, shape index: {}]   ;;  %s3303_s2 = inlined_call_operand.vmem [shape: f32[2,16,24,16], index: 2, kind: input, shape index: {}]   ;;  %s3304_s3 = inlined_call_operand.vmem [shape: bf16[16,4], index: 3, kind: input, shape index: {}]   ;;  %s3305_s4 = inlined_call_operand.vmem [shape: f32[1,4], index: 4, kind: input, shape index: {}]   ;;  %s3306_s5 = inlined_call_operand.vmem [shape: f32[1,4], index: 5, kind: input, shape index: {}]   ;;  %s3307_s6 = inlined_call_operand.vmem [shape: bf16[36,4], index: 6, kind: input, shape index: {}]   ;;  %s3308_s7 = inlined_call_operand.vmem [shape: f32[1,4], index: 7, kind: input, shape index: {}]   ;;  %s3309_s8 = inlined_call_operand.vmem [shape: f32[1,4], index: 8, kind: input, shape index: {}]   ;;  %s3310_s9 = inlined_call_operand.vmem [shape: bf16[4,16], index: 9, kind: input, shape index: {}]   ;;  %s3311_s10 = inlined_call_operand.vmem [shape: f32[1,16], index: 10, kind: input, shape index: {}]   ;;  %s3312_s11 = inlined_call_operand.vmem [shape: f32[1,16], index: 11, kind: input, shape index: {}]   ;;  %s3313_s12 = inlined_call_operand.vmem [shape: f32[2,16,24,16], index: 12, kind: output, shape index: {}]  }
   0x1   :  { %3315 = sst [smem:[#allocation5_spill]] %s3304_s3  ;;  %s2587_s23 = smov 0  }
   0x2   :  { %s2589_s24 = smov 0   ;;  %s2591_s25 = smov 0  }
   0x3 LB: > { %3316 = sst [smem:[#allocation2_spill]] %s2502_s24  ;;  %s31_s26 = sadd.s32 1, %s2498_s23  ;;  %s2506_s25 = sphi %s2591_s25, %s22_s25   ;;  %s2502_s24 = sphi %s2589_s24, %s3326_s24   ;;  %s2498_s23 = sphi %s2587_s23, %s3328_s23   ;;  %s2494_s22 = sphi %s2585_s22, %s3324_s22   ;;  %s2490_s21 = sphi %s2583_s21, %s3327_s21  }
   0x4   : > { %s34_s27 = sadd.s32 1, %s2502_s24  ;;  %p32_p0 = scmp.ge.s32.totalorder %s31_s26, 4 }
   0x5   : > { %p2005_p1 = scmp.ge.s32.totalorder %s2506_s25, 1  ;;  %p448_p2 = scmp.lt.s32.totalorder %s2506_s25, 9 }
   0x6   : > { %s3330_s26 = smov (%p32_p0, %s31_s26), 0  ;;  %s3332_s27 = smov (!%p32_p0, %s34_s27), %s2502_s24 }
   0x7   : > { %3317 = sst [smem:[#allocation3_spill]] %s3330_s26  ;;  %p449_p3 = pnand %p2005_p1, %p448_p2 }
   0x8   : > { %p36_p4 = scmp.ge.s32.totalorder %s3332_s27, 2  ;;  %s3319_s3 = sld [smem:[#allocation5_spill]] (!%p449_p3) }
   0x9   : > { %452 = sbr.rel (%p449_p3) target bundleno = 864 (0x360), region = 68  ;;  %s2006_s30 = sshll.u32 (!%p449_p3), %s2490_s21, 2 }
   0xa   : > { %s3334_s27 = smov (%p36_p4, %s3332_s27), 0  ;;  %p527_p5 = scmp.lt.s32.totalorder (!%p449_p3), %s2494_s22, 1 }
   0xb   : > { %3318 = sst [smem:[#allocation4_spill]] %s3334_s27  ;;  %p529_p6 = scmp.lt.s32.totalorder (!%p449_p3), %s2006_s30, 15 }
   0xc   : > { %s2009_s13 = sadd.s32 (!%p449_p3), 4294967295, %s2006_s30  ;;  %s555_s17 = sadd.s32 (!%p449_p3), 4, %s2006_s30 }
   0xd   : > { %p539_p7 = scmp.gt.s32.totalorder (!%p449_p3), %s2009_s13, 0  ;;  %p2010_p8 = scmp.lt.s32.totalorder (!%p449_p3), %s2009_s13, 15 }
   0xe   : > { %v2452_v0 = vld [vmem:[%s3319_s3] sm:$0xff]   ;;  %v2508_v1 = vmov 0.0   ;;  %vm2509_vm0 = vmmov 0   ;;  %s3336_s22 = smov (!%p527_p5, %s2494_s22), 1  ;;  %p556_p9 = scmp.lt.s32.totalorder %s555_s17, 15  ;;  %vm618_vm1 = vcmask 130048   ;;  %v819_v30 = vlaneseq }
   0xf   : > { %2084 = vmatprep.subr.bf16.mxu0 %v2508_v1  ;;  %2154 = vmatprep.subr.bf16.mxu1 %v2508_v1  ;;  %s530_s14 = scalar_select %p529_p6, %s2006_s30, 15  ;;  %v2686_v29 = vld [vmem:[%s3305_s4] ss:$0 sm:$0xff]  ;;  %v2709_v49 = vrot.slane %v2508_v1, 1  ;;  %v2712_v50 = vrot.slane %v2508_v1, 7  ;;  %vm1536_vm6 = vcmask 1041408  }
  0x10   : > { %2085 = vmatpush3.bf16.msra.mxu0 %v2452_v0  ;;  %2155 = vmatpush3.bf16.msra.mxu1 %v2452_v0  ;;  %s3338_s13 = smov (!%p539_p7, %s2009_s13), 0  ;;  %s2159_s16 = smul.u32 48, %s3336_s22  ;;  %v2691_v32 = vld [vmem:[%s3306_s5] ss:$0 sm:$0xff]  ;;  %v2695_v39 = vshrl.u32 %v819_v30, 7  ;;  %vm1388_vm7 = vcmask 31744  }
  0x11   : > { %2086 = vmatprep.mubr.msk.bf16.mxu0 %vm2509_vm0, %v2508_v1  ;;  %2118 = vmatprep.mubr.msk.bf16.mxu1 %vm2509_vm0, %v2508_v1  ;;  %s2158_s15 = smul.u32 3, %s530_s14  ;;  %s3340_s13 = smov (!%p2010_p8, %s3338_s13), 15  ;;  %vm1401_vm8 = vcmask 64512   ;;  %vm1414_vm9 = vcmask 97280   ;;  %vm1439_vm10 = vcmask 162816   ;;  %vm1452_vm11 = vcmask 195584  }
  0x12   : > { %s3342_s17 = smov (!%p556_p9, %s555_s17), 15  ;;  %s2160_s19 = smul.u32 3, %s3340_s13  ;;  %vm1030_vm4 = vcmp.lt.s32.totalorder %v2695_v39, 7  ;;  %vm993_vm5 = vcmp.lt.s32.totalorder %v2695_v39, 1  ;;  %vm1465_vm12 = vcmask 228352   ;;  %vm1478_vm13 = vcmask 261120  }
  0x13   : > { %s2625_s18 = sadd.s32 %s2159_s16, %s2158_s15  ;;  %s3344_s17 = smov (!%p556_p9, %s3342_s17), 15  ;;  %vm1517_vm14 = vcmask 293888  }
  0x14   : > { %s2007_s20 = sshll.u32 %s2625_s18, 3  ;;  %s547_s28 = sadd.s32 %s2160_s19, %s2159_s16 }
  0x15   : > { %s2015_s29 = sshll.u32 %s547_s28, 3  ;;  %s2161_s3 = smul.u32 3, %s3344_s17 }
  0x16   : > { %s549_s14 = scalar_lea.vmem %s3302_s1, %s2015_s29  ;;  %s2636_s24 = scalar_lea.vmem %s3301_s0, %s2007_s20 }
  0x17   : > { %v595_v2 = vld [vmem:[%s549_s14] sm:$0xff]  ;;  %v596_v3 = vld [vmem:[%s549_s14 + $0x8] sm:$0xff]  ;;  %s564_s22 = sadd.s32 %s2161_s3, %s2159_s16  ;;  %v597_v9 = vld [vmem:[%s549_s14 + $0x10] sm:$0xff]  ;;  %p877_p10 = scmp.gt.s32.totalorder %s2490_s21, 0 }
  0x18   : > { %v601_v4 = vpack.c.bf16 %v596_v3, %v595_v2  ;;  %s2020_s13 = sshll.u32 %s564_s22, 3  ;;  %v583_v8 = vld [vmem:[%s2636_s24] sm:$0xff]  ;;  %v584_v11 = vld [vmem:[%s2636_s24 + $0x8] sm:$0xff]  ;;  %v585_v12 = vld [vmem:[%s2636_s24 + $0x10] sm:$0xff]  ;;  %p917_p11 = scmp.lt.s32.totalorder %s2490_s21, 3 }
  0x19   : > { %s2641_s26 = scalar_lea.vmem %s3303_s2, %s2020_s13  ;;  %v602_v10 = vpack.c.bf16 %v583_v8, %v597_v9  ;;  %v603_v13 = vpack.c.bf16 %v585_v12, %v584_v11  ;;  %v586_v14 = vld [vmem:[%s2636_s24 + $0x18] sm:$0xff]  ;;  %v587_v15 = vld [vmem:[%s2636_s24 + $0x20] sm:$0xff]  ;;  %v588_v17 = vld [vmem:[%s2636_s24 + $0x28] sm:$0xff]  ;;  %s2510_s21 = smov 28  }
  0x1a   : > { %2087 = vmatmul.mubr.msk.bf16.vlgmr.msra.gmra.mxu0 %vm618_vm1, %v601_v4  ;;  %v599_v5 = vld [vmem:[%s2641_s26 + $0x8] sm:$0xff]  ;;  %v600_v6 = vld [vmem:[%s2641_s26 + $0x10] sm:$0xff]  ;;  %v604_v16 = vpack.c.bf16 %v587_v15, %v586_v14  ;;  %v590_v20 = vld [vmem:[%s2636_s24 + $0x38] sm:$0xff]  ;;  %s878_s3 = scalar_select %p877_p10, 1, 0 }
  0x1b   : > { %v609_v7 = vpack.c.bf16 %v600_v6, %v599_v5  ;;  %2090 = vmatprep.mubr.msk.bf16.mxu0 %vm2509_vm0, %v2508_v1  ;;  %v589_v18 = vld [vmem:[%s2636_s24 + $0x30] sm:$0xff]  ;;  %v591_v21 = vld [vmem:[%s2636_s24 + $0x40] sm:$0xff]  ;;  %v592_v23 = vld [vmem:[%s2636_s24 + $0x48] sm:$0xff]  ;;  %s918_s28 = scalar_select %p917_p11, 1, 0 }
  0x1c   : > { %v605_v19 = vpack.c.bf16 %v589_v18, %v588_v17  ;;  %v606_v22 = vpack.c.bf16 %v591_v21, %v590_v20  ;;  %v593_v24 = vld [vmem:[%s2636_s24 + $0x50] sm:$0xff]  ;;  %v594_v26 = vld [vmem:[%s2636_s24 + $0x58] sm:$0xff]  ;;  %v598_v27 = vld [vmem:[%s2641_s26] sm:$0xff]  ;;  %v879_v34 = vstv %s878_s3  ;;  %s2511_s22 = smov 4   ;;  %s2512_s30 = smov 8  }
  0x1d   : > { %2119 = vmatmul.mubr.msk.bf16.vlgmr.msra.gmra.mxu1 %vm618_vm1, %v609_v7  ;;  %v607_v25 = vpack.c.bf16 %v593_v24, %v592_v23  ;;  %v608_v28 = vpack.c.bf16 %v598_v27, %v594_v26  ;;  %v919_v38 = vstv %s918_s28  ;;  %vm2698_vm2 = vcmp.eq.s32.totalorder %v879_v34, 1  ;;  %s2513_s15 = smov 16   ;;  %s2514_s13 = smov 12  }
  0x1e   : > { %vm2704_vm3 = vcmp.eq.s32.totalorder %v919_v38, 1  ;;  %s2515_s17 = smov 20   ;;  %s2516_s19 = smov 24  }
  0x1f   : > { %s2517_s28 = smov 32   ;;  %s3230_s29 = scalar_lea.vmem %s3313_s12, %s2007_s20 }
  0x22   : > { %2091 = vmatmul.mubr.msk.bf16.gmra.mxu0 %vm618_vm1, %v602_v10 }
  0x23   : > { %2094 = vmatprep.mubr.msk.bf16.mxu0 %vm2509_vm0, %v2508_v1 }
  0x2a   : > { %2095 = vmatmul.mubr.msk.bf16.gmra.mxu0 %vm618_vm1, %v603_v13 }
  0x2b   : > { %2098 = vmatprep.mubr.msk.bf16.mxu0 %vm2509_vm0, %v2508_v1 }
  0x32   : > { %2099 = vmatmul.mubr.msk.bf16.gmra.mxu0 %vm618_vm1, %v604_v16 }
  0x33   : > { %2102 = vmatprep.mubr.msk.bf16.mxu0 %vm2509_vm0, %v2508_v1 }
  0x3a   : > { %2103 = vmatmul.mubr.msk.bf16.gmra.mxu0 %vm618_vm1, %v605_v19 }
  0x3b   : > { %2106 = vmatprep.mubr.msk.bf16.mxu0 %vm2509_vm0, %v2508_v1 }
  0x42   : > { %2107 = vmatmul.mubr.msk.bf16.gmra.mxu0 %vm618_vm1, %v606_v22 }
  0x43   : > { %2110 = vmatprep.mubr.msk.bf16.mxu0 %vm2509_vm0, %v2508_v1 }
  0x4a   : > { %2111 = vmatmul.mubr.msk.bf16.gmra.mxu0 %vm618_vm1, %v607_v25 }
  0x4b   : > { %2114 = vmatprep.mubr.msk.bf16.mxu0 %vm2509_vm0, %v2508_v1 }
  0x52   : > { %2115 = vmatmul.mubr.msk.bf16.gmra.mxu0 %vm618_vm1, %v608_v28 }
  0xda   : > { %v680_v31 = vpop.f32.mrf.mxu0 }
  0xdb   : > { %v758_v33 = vmul.f32 %v2686_v29, %v680_v31 }
  0xdc   : > { %v2088_v35 = vpop.f32.mrf.mxu0 }
  0xdd   : > { %v783_v36 = vadd.f32 %v2691_v32, %v758_v33  ;;  %v744_v37 = vpop.f32.mrf.mxu1 }
  0xde   : > { %v774_v40 = vmul.f32 %v2686_v29, %v744_v37  ;;  %v683_v41 = vpop.f32.mrf.mxu0 }
  0xdf   : > { %v801_v43 = vmax.f32 %v783_v36, 0.0  ;;  %v759_v44 = vmul.f32 %v2686_v29, %v683_v41  ;;  %v2120_v45 = vpop.f32.mrf.mxu1 }
  0xe0   : > { %v799_v46 = vadd.f32 %v2691_v32, %v774_v40  ;;  %v2089_v47 = vpop.f32.mrf.mxu0 }
  0xe1   : > { %v784_v51 = vadd.f32 %v2691_v32, %v759_v44  ;;  %v747_v52 = vpop.f32.mrf.mxu1  ;;  %v957_v53 = vsel %vm2698_vm2, %v801_v43, 0.0 }
  0xe2   : > { %v817_v54 = vmax.f32 %v799_v46, 0.0  ;;  %v688_v55 = vpop.f32.mrf.mxu0  ;;  %v975_v56 = vrot.slane %v957_v53, 7  ;;  %v1012_v57 = vrot.slane %v957_v53, 1 }
  0xe3   : > { %v802_v58 = vmax.f32 %v784_v51, 0.0  ;;  %v2121_v59 = vpop.f32.mrf.mxu1 }
  0xe4   : > { %v2092_v60 = vpop.f32.mrf.mxu0  ;;  %v2721_v61 = vsel %vm2704_vm3, %v817_v54, 0.0  ;;  %v2726_v62 = vsel %vm1030_vm4, %v2709_v49, %v1012_v57  ;;  %v2731_v63 = vsel %vm993_vm5, %v2712_v50, %v975_v56 }
  0xe5   : > { %v2212_v0 = vpack.i.bf16 %v2508_v1, %v2721_v61  ;;  %v991_v2 = vrot.slane %v2721_v61, 7  ;;  %v1028_v3 = vrot.slane %v2721_v61, 1  ;;  %v958_v4 = vsel %vm2698_vm2, %v802_v58, 0.0 }
  0xe6   : > { %v691_v5 = vpop.f32.mrf.mxu0  ;;  %v2217_v6 = vpack.i.bf16 %v958_v4, %v957_v53  ;;  %v976_v7 = vrot.slane %v958_v4, 7  ;;  %v1013_v8 = vrot.slane %v958_v4, 1 }
  0xe7   : > { %v761_v9 = vmul.f32 %v2686_v29, %v691_v5  ;;  %2213 = vrot.lane.b32.xlu1 %v2212_v0, %s2510_s21  ;;  %v2746_v10 = vsel %vm993_vm5, %v991_v2, %v2712_v50  ;;  %v2753_v11 = vsel %vm1030_vm4, %v1028_v3, %v2709_v49 }
  0xe8   : > { %2218 = vrot.lane.b32.xlu0 %v2217_v6, %s2511_s22  ;;  %v2093_v12 = vpop.f32.mrf.mxu0  ;;  %v1046_v13 = vsel %vm1030_vm4, %v1013_v8, %v2709_v49  ;;  %v1047_v14 = vsel %vm1030_vm4, %v1012_v57, %v1013_v8  ;;  %v2447_v15 = vpack.i.bf16 %v2726_v62, %v2753_v11  ;;  %v2765_v16 = vsel %vm993_vm5, %v975_v56, %v976_v7 }
  0xe9   : > { %v786_v17 = vadd.f32 %v2691_v32, %v761_v9  ;;  %v2222_v18 = vpack.i.bf16 %v1046_v13, %v1047_v14  ;;  %v2771_v19 = vsel %vm993_vm5, %v976_v7, %v2712_v50 }
  0xea   : > { %v696_v20 = vpop.f32.mrf.mxu0 }
  0xeb   : > { %v804_v21 = vmax.f32 %v786_v17, 0.0  ;;  %v762_v22 = vmul.f32 %v2686_v29, %v696_v20  ;;  %2223 = vrot.lane.b32.xlu1 %v2222_v18, %s2512_s30 }
  0xec   : > { %v2096_v23 = vpop.f32.mrf.mxu0 }
  0xed   : > { %v787_v24 = vadd.f32 %v2691_v32, %v762_v22  ;;  %v2227_v25 = vpack.i.bf16 %v804_v21, %v2508_v1  ;;  %v1015_v27 = vrot.slane %v804_v21, 1  ;;  %v978_v28 = vrot.slane %v804_v21, 7 }
  0xee   : > { %v699_v26 = vpop.f32.mrf.mxu0 }
  0xef   : > { %v805_v30 = vmax.f32 %v787_v24, 0.0  ;;  %2228 = vrot.lane.b32.xlu0 %v2227_v25, %s2511_s22  ;;  %v1045_v38 = vsel %vm1030_vm4, %v2709_v49, %v1015_v27  ;;  %v2785_v40 = vsel %vm993_vm5, %v2712_v50, %v978_v28 }
  0xf0   : > { %v2097_v31 = vpop.f32.mrf.mxu0 }
  0xf1   : > { %v2237_v33 = vpack.i.bf16 %v2508_v1, %v805_v30  ;;  %v2232_v34 = vpack.i.bf16 %v805_v30, %v804_v21  ;;  %v1016_v35 = vrot.slane %v805_v30, 1  ;;  %v979_v36 = vrot.slane %v805_v30, 7 }
  0xf2   : > { %v704_v37 = vpop.f32.mrf.mxu0 }
  0xf3   : > { %v764_v41 = vmul.f32 %v2686_v29, %v704_v37  ;;  %2238 = vrot.lane.b32.xlu1 %v2237_v33, %s2511_s22  ;;  %2233 = vrot.lane.b32.xlu0 %v2232_v34, %s2513_s15  ;;  %v1044_v42 = vsel %vm1030_vm4, %v1015_v27, %v1016_v35  ;;  %v2794_v43 = vsel %vm993_vm5, %v978_v28, %v979_v36 }
  0xf4   : > { %v2100_v44 = vpop.f32.mrf.mxu0  ;;  %v2242_v45 = vpack.i.bf16 %v1044_v42, %v1045_v38  ;;  %v2247_v46 = vpack.i.bf16 %v2794_v43, %v2785_v40  ;;  %v1043_v51 = vsel %vm1030_vm4, %v1016_v35, %v2709_v49  ;;  %v2820_v7 = vsel %vm993_vm5, %v979_v36, %v2712_v50 }
  0xf5   : > { %v789_v47 = vadd.f32 %v2691_v32, %v764_v41  ;;  %v2252_v56 = vpack.i.bf16 %v1043_v51, %v1044_v42  ;;  %v2453_v44 = vld [vmem:[%s3307_s6 + $0x10] ss:$0 sps:$4 sm:$0x33]  }
  0xf6   : > { %v707_v52 = vpop.f32.mrf.mxu0  ;;  %2156 = vmatprep.subr.msk.bf16.mxu1 %vm1536_vm6, %v2453_v44 }
  0xf7   : > { %v807_v53 = vmax.f32 %v789_v47, 0.0  ;;  %v765_v54 = vmul.f32 %v2686_v29, %v707_v52  ;;  %2243 = vrot.lane.b32.xlu1 %v2242_v45, %s2512_s30  ;;  %2248 = vrot.lane.b32.xlu0 %v2247_v46, %s2514_s13 }
  0xf8   : > { %v2101_v55 = vpop.f32.mrf.mxu0 }
  0xf9   : > { %v790_v57 = vadd.f32 %v2691_v32, %v765_v54  ;;  %v2257_v58 = vpack.i.bf16 %v807_v53, %v2508_v1  ;;  %v1018_v59 = vrot.slane %v807_v53, 1  ;;  %v981_v60 = vrot.slane %v807_v53, 7  ;;  %v2454_v55 = vld [vmem:[%s3307_s6 + $0x8] sm:$0xff]  }
  0xfa   : > { %v712_v0 = vpop.f32.mrf.mxu0 }
  0xfb   : > { %v808_v4 = vmax.f32 %v790_v57, 0.0  ;;  %2253 = vrot.lane.b32.xlu0 %v2252_v56, %s2515_s17  ;;  %2258 = vrot.lane.b32.xlu1 %v2257_v58, %s2513_s15  ;;  %v1042_v5 = vsel %vm1030_vm4, %v2709_v49, %v1018_v59  ;;  %v2815_v6 = vsel %vm993_vm5, %v2712_v50, %v981_v60  ;;  %v1538_v58 = vsel %vm1536_vm6, %v2453_v44, 0 }
  0xfc   : > { %v2104_v8 = vpop.f32.mrf.mxu0  ;;  %v2267_v9 = vpack.i.bf16 %v1042_v5, %v1043_v51  ;;  %v2262_v12 = vpack.i.bf16 %v2815_v6, %v2820_v7  ;;  %2123 = vmatpush3.bf16.msra.mxu1 %v1538_v58 }
  0xfd   : > { %v1019_v14 = vrot.slane %v808_v4, 1  ;;  %v2277_v20 = vpack.i.bf16 %v808_v4, %v807_v53  ;;  %v982_v23 = vrot.slane %v808_v4, 7  ;;  %v2282_v26 = vpack.i.bf16 %v2508_v1, %v808_v4  ;;  %2124 = vmatprep.subr.bf16.mxu1 %v2454_v55 }
  0xfe   : > { %v715_v13 = vpop.f32.mrf.mxu0 }
  0xff   : > { %2268 = vrot.lane.b32.xlu0 %v2267_v9, %s2512_s30  ;;  %2263 = vrot.lane.b32.xlu1 %v2262_v12, %s2514_s13  ;;  %v767_v18 = vmul.f32 %v2686_v29, %v715_v13  ;;  %v1041_v22 = vsel %vm1030_vm4, %v1018_v59, %v1019_v14  ;;  %v1040_v30 = vsel %vm1030_vm4, %v1019_v14, %v2709_v49 }
 0x100   : > { %v2105_v17 = vpop.f32.mrf.mxu0  ;;  %v2287_v27 = vpack.i.bf16 %v1041_v22, %v1042_v5  ;;  %v2838_v31 = vsel %vm993_vm5, %v981_v60, %v982_v23  ;;  %v2302_v35 = vpack.i.bf16 %v1040_v30, %v1041_v22  ;;  %v2859_v47 = vsel %vm993_vm5, %v982_v23, %v2712_v50  ;;  %2125 = vmatpush3.bf16.msra.mxu1 %v2454_v55 }
 0x101   : > { %v792_v25 = vadd.f32 %v2691_v32, %v767_v18  ;;  %v2292_v36 = vpack.i.bf16 %v2838_v31, %v2815_v6  ;;  %v2307_v60 = vpack.i.bf16 %v2859_v47, %v2838_v31 }
 0x102   : > { %v720_v21 = vpop.f32.mrf.mxu0 }
 0x103   : > { %2278 = vrot.lane.b32.xlu1 %v2277_v20, %s2511_s22  ;;  %2273 = vrot.lane.b32.xlu0 %v2277_v20, %s2510_s21  ;;  %v2842_v34 = vmax.f32 %v792_v25, 0.0  ;;  %v768_v37 = vmul.f32 %v2686_v29, %v720_v21  ;;  %v2455_v21 = vld [vmem:[%s3307_s6] sm:$0xff]  }
 0x104   : > { %v2108_v24 = vpop.f32.mrf.mxu0  ;;  %2126 = vmatprep.subr.bf16.mxu1 %v2455_v21 }
 0x105   : > { %v2312_v46 = vpack.i.bf16 %v2842_v34, %v2508_v1  ;;  %v1021_v51 = vrot.slane %v2842_v34, 1  ;;  %v793_v52 = vadd.f32 %v2691_v32, %v768_v37  ;;  %v984_v54 = vrot.slane %v2842_v34, 7  ;;  %2127 = vmatpush3.bf16.msra.mxu1 %v2455_v21 }
 0x106   : > { %v723_v28 = vpop.f32.mrf.mxu0 }
 0x107   : > { %2283 = vrot.lane.b32.xlu0 %v2282_v26, %s2513_s15  ;;  %2288 = vrot.lane.b32.xlu1 %v2287_v27, %s2515_s17  ;;  %v1039_v4 = vsel %vm1030_vm4, %v2709_v49, %v1021_v51  ;;  %v811_v8 = vmax.f32 %v793_v52, 0.0  ;;  %v2884_v12 = vsel %vm993_vm5, %v2712_v50, %v984_v54 }
 0x108   : > { %v2109_v33 = vpop.f32.mrf.mxu0  ;;  %v2327_v20 = vpack.i.bf16 %v1039_v4, %v1040_v30  ;;  %v2322_v22 = vpack.i.bf16 %v2884_v12, %v2859_v47 }
 0x109   : > { %v2337_v27 = vpack.i.bf16 %v2508_v1, %v811_v8  ;;  %v1022_v28 = vrot.slane %v811_v8, 1 }
 0x10a   : > { %v728_v38 = vpop.f32.mrf.mxu0 }
 0x10b   : > { %v770_v41 = vmul.f32 %v2686_v29, %v728_v38  ;;  %2303 = vrot.lane.b32.xlu1 %v2302_v35, %s2512_s30  ;;  %2293 = vrot.lane.b32.xlu0 %v2292_v36, %s2516_s19  ;;  %v1038_v55 = vsel %vm1030_vm4, %v1021_v51, %v1022_v28  ;;  %v1037_v21 = vsel %vm1030_vm4, %v1022_v28, %v2709_v49 }
 0x10c   : > { %v2112_v42 = vpop.f32.mrf.mxu0 }
 0x10d   : > { %v795_v45 = vadd.f32 %v2691_v32, %v770_v41 }
 0x10e   : > { %v731_v53 = vpop.f32.mrf.mxu0 }
 0x10f   : > { %v2867_v56 = vmax.f32 %v795_v45, 0.0  ;;  %v771_v57 = vmul.f32 %v2686_v29, %v731_v53  ;;  %2298 = vrot.lane.b32.xlu0 %v2302_v35, %s2517_s28  ;;  %2313 = vrot.lane.b32.xlu1 %v2312_v46, %s2510_s21  ;;  %v985_v35 = vrot.slane %v811_v8, 7 }
 0x110   : > { %v2113_v59 = vpop.f32.mrf.mxu0 }
 0x111   : > { %v796_v0 = vadd.f32 %v2691_v32, %v771_v57  ;;  %v1024_v5 = vrot.slane %v2867_v56, 1  ;;  %v987_v13 = vrot.slane %v2867_v56, 7  ;;  %v2931_v58 = vsel %vm993_vm5, %v984_v54, %v985_v35 }
 0x112   : > { %v736_v9 = vpop.f32.mrf.mxu0  ;;  %v2347_v59 = vpack.i.bf16 %v1038_v55, %v1039_v4  ;;  %v2372_v61 = vpack.i.bf16 %v2867_v56, %v2508_v1 }
 0x113   : > { %v2887_v14 = vmax.f32 %v796_v0, 0.0  ;;  %2308 = vrot.lane.b32.xlu0 %v2307_v60, %s2514_s13  ;;  %2318 = vrot.lane.b32.xlu1 %v2312_v46, %s2511_s22  ;;  %v2894_v17 = vsel %vm1030_vm4, %v2709_v49, %v1024_v5  ;;  %v999_v30 = vsel %vm993_vm5, %v2712_v50, %v987_v13  ;;  %v2332_v46 = vpack.i.bf16 %v811_v8, %v2842_v34 }
 0x114   : > { %v2116_v18 = vpop.f32.mrf.mxu0  ;;  %v2352_v0 = vpack.i.bf16 %v2931_v58, %v2884_v12 }
 0x115   : > { %v2392_v23 = vpack.i.bf16 %v2887_v14, %v2867_v56  ;;  %v1025_v24 = vrot.slane %v2887_v14, 1  ;;  %v988_v25 = vrot.slane %v2887_v14, 7 }
 0x116   : > { %v739_v26 = vpop.f32.mrf.mxu0 }
 0x117   : > { %v773_v33 = vmul.f32 %v2686_v29, %v739_v26  ;;  %2328 = vrot.lane.b32.xlu0 %v2327_v20, %s2515_s17  ;;  %2323 = vrot.lane.b32.xlu1 %v2322_v22, %s2516_s19  ;;  %v1034_v36 = vsel %vm1030_vm4, %v1025_v24, %v2709_v49  ;;  %v1035_v37 = vsel %vm1030_vm4, %v1024_v5, %v1025_v24 }
 0x118   : > { %v2117_v38 = vpop.f32.mrf.mxu0  ;;  %v2407_v41 = vpack.i.bf16 %v1034_v36, %v1035_v37  ;;  %v998_v42 = vsel %vm993_vm5, %v987_v13, %v988_v25  ;;  %v2417_v44 = vpack.i.bf16 %v1035_v37, %v2894_v17  ;;  %v997_v29 = vsel %vm993_vm5, %v988_v25, %v2712_v50 }
 0x119   : > { %v798_v45 = vadd.f32 %v2691_v32, %v773_v33  ;;  %v2402_v52 = vpack.i.bf16 %v998_v42, %v999_v30  ;;  %v2412_v53 = vpack.i.bf16 %v997_v29, %v998_v42  ;;  %v2936_v32 = vsel %vm993_vm5, %v985_v35, %v2712_v50 }
 0x11a   : > { %v2362_v54 = vpack.i.bf16 %v2936_v32, %v2931_v58  ;;  %v2387_v39 = vpack.i.bf16 %v999_v30, %v2936_v32 }
 0x11b   : > { %v816_v57 = vmax.f32 %v798_v45, 0.0  ;;  %2338 = vrot.lane.b32.xlu0 %v2337_v27, %s2510_s21  ;;  %2333 = vrot.lane.b32.xlu1 %v2332_v46, %s2513_s15 }
 0x11d   : > { %v972_v34 = vsel %vm2704_vm3, %v816_v57, 0.0 }
 0x11e   : > { %v990_v60 = vrot.slane %v972_v34, 7  ;;  %v1027_v51 = vrot.slane %v972_v34, 1 }
 0x11f   : > { %2343 = vrot.lane.b32.xlu1 %v2337_v27, %s2511_s22  ;;  %2348 = vrot.lane.b32.xlu0 %v2347_v59, %s2517_s28 }
 0x120   : > { %v1033_v5 = vsel %vm1030_vm4, %v2709_v49, %v1027_v51  ;;  %v996_v48 = vsel %vm993_vm5, %v2712_v50, %v990_v60  ;;  %v995_v4 = vsel %vm993_vm5, %v990_v60, %v991_v2  ;;  %v1032_v8 = vsel %vm1030_vm4, %v1027_v51, %v1028_v3 }
 0x121   : > { %v2427_v9 = vpack.i.bf16 %v1033_v5, %v1034_v36  ;;  %v2432_v13 = vpack.i.bf16 %v996_v48, %v997_v29  ;;  %v2437_v18 = vpack.i.bf16 %v2746_v10, %v995_v4  ;;  %v2442_v20 = vpack.i.bf16 %v1032_v8, %v1033_v5 }
 0x122   : > { %v2357_v50 = vpack.i.bf16 %v1037_v21, %v1038_v55  ;;  %v2382_v2 = vpack.i.bf16 %v2894_v17, %v1037_v21  ;;  %v2397_v49 = vpack.i.bf16 %v2508_v1, %v2887_v14  ;;  %v2422_v3 = vpack.i.bf16 %v972_v34, %v2508_v1 }
 0x123   : > { %2353 = vrot.lane.b32.xlu1 %v2352_v0, %s2514_s13  ;;  %2363 = vrot.lane.b32.xlu0 %v2362_v54, %s2516_s19 }
 0x127   : > { %2358 = vrot.lane.b32.xlu1 %v2357_v50, %s2515_s17  ;;  %2368 = vrot.lane.b32.xlu0 %v2347_v59, %s2512_s30 }
 0x12b   : > { %2373 = vrot.lane.b32.xlu0 %v2372_v61, %s2513_s15  ;;  %2383 = vrot.lane.b32.xlu1 %v2382_v2, %s2512_s30 }
 0x12f   : > { %2378 = vrot.lane.b32.xlu0 %v2382_v2, %s2517_s28  ;;  %2393 = vrot.lane.b32.xlu1 %v2392_v23, %s2510_s21 }
 0x133   : > { %2388 = vrot.lane.b32.xlu0 %v2387_v39, %s2514_s13  ;;  %2398 = vrot.lane.b32.xlu1 %v2397_v49, %s2513_s15 }
 0x137   : > { %2408 = vrot.lane.b32.xlu0 %v2407_v41, %s2517_s28  ;;  %2403 = vrot.lane.b32.xlu1 %v2402_v52, %s2516_s19 }
 0x13b   : > { %2418 = vrot.lane.b32.xlu0 %v2417_v44, %s2515_s17  ;;  %2413 = vrot.lane.b32.xlu1 %v2412_v53, %s2514_s13 }
 0x13f   : > { %2423 = vrot.lane.b32.xlu0 %v2422_v3, %s2510_s21  ;;  %2428 = vrot.lane.b32.xlu1 %v2427_v9, %s2515_s17 }
 0x143   : > { %2433 = vrot.lane.b32.xlu0 %v2432_v13, %s2516_s19  ;;  %2438 = vrot.lane.b32.xlu1 %v2437_v18, %s2516_s19 }
 0x147   : > { %2443 = vrot.lane.b32.xlu0 %v2442_v20, %s2517_s28  ;;  %2448 = vrot.lane.b32.xlu1 %v2447_v15, %s2517_s28 }
 0x159   : > { %v2994_v10 = vpop.permute.xlu1 %2213 }
 0x15a   : > { %v2219_v56 = vpop.permute.xlu0 %2218 }
 0x15b   : > { %v2221_v62 = vunpack.i.h.bf16 %v2219_v56  ;;  %v2220_v11 = vunpack.i.l.bf16 %v2219_v56 }
 0x15d   : > { %v2224_v14 = vpop.permute.xlu1 %2223  ;;  %v1389_v38 = vsel %vm1388_vm7, %v2731_v63, %v2220_v11  ;;  %v1390_v41 = vsel %vm1388_vm7, %v2765_v16, %v2221_v62 }
 0x15e   : > { %v2226_v33 = vunpack.i.h.bf16 %v2224_v14  ;;  %v2225_v35 = vunpack.i.l.bf16 %v2224_v14 }
 0x160   : > { %v1402_v29 = vsel %vm1401_vm8, %v1389_v38, %v2225_v35  ;;  %v1403_v45 = vsel %vm1401_vm8, %v1390_v41, %v2226_v33 }
 0x161   : > { %v2996_v1 = vpop.permute.xlu0 %2228 }
 0x162   : > { %v2231_v49 = vunpack.i.h.bf16 %v2996_v1  ;;  %v2230_v3 = vunpack.i.l.bf16 %v2996_v1 }
 0x164   : > { %v1392_v1 = vsel %vm1388_vm7, %v2785_v40, %v2231_v49 }
 0x165   : > { %v2998_v17 = vpop.permute.xlu1 %2238  ;;  %v2234_v22 = vpop.permute.xlu0 %2233 }
 0x166   : > { %v2236_v57 = vunpack.i.h.bf16 %v2234_v22  ;;  %v2235_v34 = vunpack.i.l.bf16 %v2234_v22 }
 0x169   : > { %v3000_v23 = vpop.permute.xlu1 %2243  ;;  %v2249_v24 = vpop.permute.xlu0 %2248 }
 0x16a   : > { %v2251_v36 = vunpack.i.h.bf16 %v2249_v24  ;;  %v2250_v37 = vunpack.i.l.bf16 %v2249_v24  ;;  %v2246_v24 = vunpack.i.h.bf16 %v3000_v23 }
 0x16c   : > { %v1416_v46 = vsel %vm1414_vm9, %v1403_v45, %v2251_v36  ;;  %v1415_v52 = vsel %vm1414_vm9, %v1402_v29, %v2250_v37  ;;  %v1405_v36 = vsel %vm1401_vm8, %v1392_v1, %v2246_v24 }
 0x16d   : > { %v2254_v25 = vpop.permute.xlu0 %2253  ;;  %v3002_v26 = vpop.permute.xlu1 %2258  ;;  %v1427_v59 = vsel %vm618_vm1, %v1415_v52, %v2235_v34  ;;  %v1428_v60 = vsel %vm618_vm1, %v1416_v46, %v2236_v57 }
 0x16e   : > { %v2256_v53 = vunpack.i.h.bf16 %v2254_v25  ;;  %v2255_v55 = vunpack.i.l.bf16 %v2254_v25  ;;  %v2245_v25 = vunpack.i.l.bf16 %v3000_v23  ;;  %v2260_v29 = vunpack.i.l.bf16 %v3002_v26 }
 0x170   : > { %v1440_v54 = vsel %vm1439_vm10, %v1427_v59, %v2255_v55  ;;  %v1441_v5 = vsel %vm1439_vm10, %v1428_v60, %v2256_v53 }
 0x171   : > { %v3004_v27 = vpop.permute.xlu0 %2268  ;;  %v3006_v28 = vpop.permute.xlu1 %2263 }
 0x172   : > { %v2266_v62 = vunpack.i.h.bf16 %v3006_v28  ;;  %v2265_v11 = vunpack.i.l.bf16 %v3006_v28 }
 0x174   : > { %v1418_v23 = vsel %vm1414_vm9, %v1405_v36, %v2266_v62 }
 0x175   : > { %v3008_v15 = vpop.permute.xlu1 %2278  ;;  %v2274_v30 = vpop.permute.xlu0 %2273 }
 0x176   : > { %v2276_v8 = vunpack.i.h.bf16 %v2274_v30  ;;  %v2275_v9 = vunpack.i.l.bf16 %v2274_v30  ;;  %v1391_v30 = vsel %vm1388_vm7, %v2771_v19, %v2230_v3  ;;  %v2261_v19 = vunpack.i.h.bf16 %v3002_v26 }
 0x177   : > { %v1404_v37 = vsel %vm1401_vm8, %v1391_v30, %v2245_v25 }
 0x178   : > { %v1417_v38 = vsel %vm1414_vm9, %v1404_v37, %v2265_v11  ;;  %v1430_v55 = vsel %vm618_vm1, %v1418_v23, %v2261_v19 }
 0x179   : > { %v3014_v42 = vpop.permute.xlu0 %2283  ;;  %v3016_v44 = vpop.permute.xlu1 %2288  ;;  %v1429_v53 = vsel %vm618_vm1, %v1417_v38, %v2260_v29  ;;  %v2281_v38 = vunpack.i.h.bf16 %v3008_v15 }
 0x17a   : > { %v2291_v28 = vunpack.i.h.bf16 %v3016_v44  ;;  %v2290_v41 = vunpack.i.l.bf16 %v3016_v44 }
 0x17c   : > { %v1443_v57 = vsel %vm1439_vm10, %v1430_v55, %v2291_v28  ;;  %v1442_v34 = vsel %vm1439_vm10, %v1429_v53, %v2290_v41  ;;  %v2280_v28 = vunpack.i.l.bf16 %v3008_v15 }
 0x17d   : > { %v3022_v63 = vpop.permute.xlu1 %2303  ;;  %v2294_v16 = vpop.permute.xlu0 %2293 }
 0x17e   : > { %v2296_v51 = vunpack.i.h.bf16 %v2294_v16  ;;  %v2295_v0 = vunpack.i.l.bf16 %v2294_v16  ;;  %v2306_v29 = vunpack.i.h.bf16 %v3022_v63 }
 0x180   : > { %v1454_v48 = vsel %vm1452_vm11, %v1441_v5, %v2296_v51  ;;  %v1453_v4 = vsel %vm1452_vm11, %v1440_v54, %v2295_v0 }
 0x181   : > { %v2299_v13 = vpop.permute.xlu0 %2298  ;;  %v2314_v18 = vpop.permute.xlu1 %2313  ;;  %v1466_v50 = vsel %vm1465_vm12, %v1453_v4, %v2275_v9  ;;  %v1467_v61 = vsel %vm1465_vm12, %v1454_v48, %v2276_v8  ;;  %v2241_v9 = vunpack.i.h.bf16 %v2998_v17 }
 0x182   : > { %v2301_v20 = vunpack.i.h.bf16 %v2299_v13  ;;  %v2300_v21 = vunpack.i.l.bf16 %v2299_v13  ;;  %v2316_v59 = vunpack.i.h.bf16 %v2314_v18  ;;  %v2315_v26 = vunpack.i.l.bf16 %v2314_v18 }
 0x183   : > { %v2240_v13 = vunpack.i.l.bf16 %v2998_v17  ;;  %v1394_v3 = vsel %vm1388_vm7, %v2820_v7, %v2241_v9  ;;  %v2285_v7 = vunpack.i.l.bf16 %v3014_v42 }
 0x184   : > { %v1479_v2 = vsel %vm1478_vm13, %v1466_v50, %v2300_v21  ;;  %v1480_v39 = vsel %vm1478_vm13, %v1467_v61, %v2301_v20  ;;  %v2271_v50 = vunpack.i.h.bf16 %v3004_v27  ;;  %v2270_v61 = vunpack.i.l.bf16 %v3004_v27 }
 0x185   : > { %v1491_v56 = vpack.c.bf16 %v1480_v39, %v1479_v2  ;;  %v2309_v14 = vpop.permute.xlu0 %2308  ;;  %v3036_v22 = vpop.permute.xlu1 %2318  ;;  %v1393_v49 = vsel %vm1388_vm7, %v2794_v43, %v2240_v13  ;;  %v2286_v43 = vunpack.i.h.bf16 %v3014_v42 }
 0x186   : > { %v2311_v2 = vunpack.i.h.bf16 %v2309_v14  ;;  %v2310_v39 = vunpack.i.l.bf16 %v2309_v14  ;;  %v1407_v24 = vsel %vm1401_vm8, %v1394_v3, %v2271_v50  ;;  %v1406_v25 = vsel %vm1401_vm8, %v1393_v49, %v2270_v61 }
 0x187   : > { %2128 = vmatprep.mubr.msk.bf16.mxu1 %vm1517_vm14, %v1491_v56 }
 0x188   : > { %v1420_v27 = vsel %vm1414_vm9, %v1407_v24, %v2311_v2  ;;  %v1419_v14 = vsel %vm1414_vm9, %v1406_v25, %v2310_v39 }
 0x189   : > { %v3047_v33 = vpop.permute.xlu0 %2328  ;;  %v2324_v35 = vpop.permute.xlu1 %2323  ;;  %v1431_v37 = vsel %vm618_vm1, %v1419_v14, %v2285_v7  ;;  %v1432_v23 = vsel %vm618_vm1, %v1420_v27, %v2286_v43 }
 0x18a   : > { %v2326_v40 = vunpack.i.h.bf16 %v2324_v35  ;;  %v2325_v45 = vunpack.i.l.bf16 %v2324_v35  ;;  %v2331_v62 = vunpack.i.h.bf16 %v3047_v33  ;;  %v2330_v11 = vunpack.i.l.bf16 %v3047_v33 }
 0x18c   : > { %v1456_v44 = vsel %vm1452_vm11, %v1443_v57, %v2326_v40  ;;  %v1455_v16 = vsel %vm1452_vm11, %v1442_v34, %v2325_v45  ;;  %v1445_v33 = vsel %vm1439_vm10, %v1432_v23, %v2331_v62  ;;  %v1444_v41 = vsel %vm1439_vm10, %v1431_v37, %v2330_v11 }
 0x18d   : > { %v3057_v46 = vpop.permute.xlu0 %2338  ;;  %v3059_v52 = vpop.permute.xlu1 %2333  ;;  %v1468_v5 = vsel %vm1465_vm12, %v1455_v16, %v2315_v26  ;;  %v1469_v48 = vsel %vm1465_vm12, %v1456_v44, %v2316_v59  ;;  %v2305_v40 = vunpack.i.l.bf16 %v3022_v63  ;;  %v1395_v59 = vsel %vm1388_vm7, %v2815_v6, %v2280_v28 }
 0x18e   : > { %v2341_v45 = vunpack.i.h.bf16 %v3057_v46  ;;  %v2340_v53 = vunpack.i.l.bf16 %v3057_v46  ;;  %v1396_v26 = vsel %vm1388_vm7, %v2838_v31, %v2281_v38  ;;  %v2320_v46 = vunpack.i.l.bf16 %v3036_v22 }
 0x190   : > { %v1397_v61 = vsel %vm1388_vm7, %v2859_v47, %v2320_v46 }
 0x191   : > { %v3067_v60 = vpop.permute.xlu1 %2343  ;;  %v2349_v51 = vpop.permute.xlu0 %2348 }
 0x192   : > { %v2351_v0 = vunpack.i.h.bf16 %v2349_v51  ;;  %v2350_v54 = vunpack.i.l.bf16 %v2349_v51  ;;  %v2345_v6 = vunpack.i.l.bf16 %v3067_v60  ;;  %v2346_v39 = vunpack.i.h.bf16 %v3067_v60 }
 0x194   : > { %v1482_v4 = vsel %vm1478_vm13, %v1469_v48, %v2351_v0  ;;  %v1481_v8 = vsel %vm1478_vm13, %v1468_v5, %v2350_v54  ;;  %v2321_v0 = vunpack.i.h.bf16 %v3036_v22  ;;  %v1408_v48 = vsel %vm1401_vm8, %v1395_v59, %v2305_v40 }
 0x195   : > { %v1492_v20 = vpack.c.bf16 %v1482_v4, %v1481_v8  ;;  %v2354_v21 = vpop.permute.xlu1 %2353  ;;  %v2364_v18 = vpop.permute.xlu0 %2363  ;;  %v1409_v4 = vsel %vm1401_vm8, %v1396_v26, %v2306_v29  ;;  %v2336_v22 = vunpack.i.h.bf16 %v3059_v52  ;;  %v1399_v49 = vsel %vm1388_vm7, %v2931_v58, %v2345_v6 }
 0x196   : > { %v2366_v30 = vunpack.i.h.bf16 %v2364_v18  ;;  %v2365_v1 = vunpack.i.l.bf16 %v2364_v18  ;;  %v2356_v34 = vunpack.i.h.bf16 %v2354_v21  ;;  %v2355_v15 = vunpack.i.l.bf16 %v2354_v21 }
 0x197   : > { %2129 = vmatmul.mubr.msk.bf16.vlgmr.msra.gmra.mxu1 %vm1517_vm14, %v1492_v20  ;;  %v2335_v21 = vunpack.i.l.bf16 %v3059_v52  ;;  %v1398_v2 = vsel %vm1388_vm7, %v2884_v12, %v2321_v0  ;;  %v1400_v29 = vsel %vm1388_vm7, %v2936_v32, %v2346_v39 }
 0x198   : > { %v1458_v42 = vsel %vm1452_vm11, %v1445_v33, %v2366_v30  ;;  %v1457_v19 = vsel %vm1452_vm11, %v1444_v41, %v2365_v1  ;;  %v1422_v13 = vsel %vm1414_vm9, %v1409_v4, %v2356_v34  ;;  %v1421_v20 = vsel %vm1414_vm9, %v1408_v48, %v2355_v15 }
 0x199   : > { %v3082_v56 = vpop.permute.xlu1 %2358  ;;  %v3084_v17 = vpop.permute.xlu0 %2368  ;;  %v1470_v51 = vsel %vm1465_vm12, %v1457_v19, %v2340_v53  ;;  %v1471_v63 = vsel %vm1465_vm12, %v1458_v42, %v2341_v45  ;;  %v1433_v3 = vsel %vm618_vm1, %v1421_v20, %v2335_v21  ;;  %v1434_v52 = vsel %vm618_vm1, %v1422_v13, %v2336_v22 }
 0x19a   : > { %v2361_v18 = vunpack.i.h.bf16 %v3082_v56  ;;  %v2360_v50 = vunpack.i.l.bf16 %v3082_v56  ;;  %v2371_v56 = vunpack.i.h.bf16 %v3084_v17  ;;  %v2370_v27 = vunpack.i.l.bf16 %v3084_v17 }
 0x19c   : > { %v1446_v62 = vsel %vm1439_vm10, %v1433_v3, %v2360_v50  ;;  %v1447_v12 = vsel %vm1439_vm10, %v1434_v52, %v2361_v18  ;;  %v1410_v53 = vsel %vm1401_vm8, %v1397_v61, %v2370_v27 }
 0x19d   : > { %v3094_v35 = vpop.permute.xlu0 %2373  ;;  %v3096_v36 = vpop.permute.xlu1 %2383 }
 0x19e   : > { %v2386_v58 = vunpack.i.h.bf16 %v3096_v36  ;;  %v2385_v43 = vunpack.i.l.bf16 %v3096_v36  ;;  %v1411_v36 = vsel %vm1401_vm8, %v1398_v2, %v2371_v56  ;;  %v2215_v56 = vunpack.i.l.bf16 %v2994_v10 }
 0x1a0   : > { %v1413_v34 = vsel %vm1401_vm8, %v1400_v29, %v2386_v58  ;;  %v1412_v15 = vsel %vm1401_vm8, %v1399_v49, %v2385_v43 }
 0x1a1   : > { %v2379_v55 = vpop.permute.xlu0 %2378  ;;  %v2394_v57 = vpop.permute.xlu1 %2393 }
 0x1a2   : > { %v2381_v44 = vunpack.i.h.bf16 %v2379_v55  ;;  %v2380_v16 = vunpack.i.l.bf16 %v2379_v55  ;;  %v2396_v60 = vunpack.i.h.bf16 %v2394_v57  ;;  %v2395_v11 = vunpack.i.l.bf16 %v2394_v57 }
 0x1a3   : > { %v2376_v55 = vunpack.i.h.bf16 %v3094_v35  ;;  %v2375_v57 = vunpack.i.l.bf16 %v3094_v35 }
 0x1a4   : > { %v1484_v54 = vsel %vm1478_vm13, %v1471_v63, %v2381_v44  ;;  %v1483_v5 = vsel %vm1478_vm13, %v1470_v51, %v2380_v16 }
 0x1a5   : > { %v1493_v8 = vpack.c.bf16 %v1484_v54, %v1483_v5  ;;  %v2389_v31 = vpop.permute.xlu0 %2388  ;;  %v3123_v9 = vpop.permute.xlu1 %2398 }
 0x1a6   : > { %v2391_v33 = vunpack.i.h.bf16 %v2389_v31  ;;  %v2390_v41 = vunpack.i.l.bf16 %v2389_v31  ;;  %v2401_v44 = vunpack.i.h.bf16 %v3123_v9  ;;  %v2400_v32 = vunpack.i.l.bf16 %v3123_v9 }
 0x1a7   : > { %2132 = vmatprep.mubr.msk.bf16.mxu1 %vm1517_vm14, %v1493_v8 }
 0x1a8   : > { %v1424_v51 = vsel %vm1414_vm9, %v1411_v36, %v2391_v33  ;;  %v1423_v63 = vsel %vm1414_vm9, %v1410_v53, %v2390_v41  ;;  %v1677_v33 = vld [vmem:[%s3310_s9] sm:$0x3] }
 0x1a9   : > { %v2409_v24 = vpop.permute.xlu0 %2408  ;;  %v2404_v25 = vpop.permute.xlu1 %2403  ;;  %v1435_v4 = vsel %vm618_vm1, %v1423_v63, %v2375_v57  ;;  %v1436_v6 = vsel %vm618_vm1, %v1424_v51, %v2376_v55  ;;  %2157 = vmatprep.subr.msk.bf16.mxu1 %vm1536_vm6, %v1677_v33  ;;  %v1697_v41 = vsel %vm1536_vm6, %v1677_v33, 0  ;;  %v2045_v53 = vld [vmem:[%s3309_s8] ss:$0 sm:$0xff] }
 0x1aa   : > { %v2406_v14 = vunpack.i.h.bf16 %v2404_v25  ;;  %v2405_v47 = vunpack.i.l.bf16 %v2404_v25  ;;  %v2411_v1 = vunpack.i.h.bf16 %v2409_v24  ;;  %v2410_v37 = vunpack.i.l.bf16 %v2409_v24  ;;  %2141 = vmatpush3.bf16.msra.mxu1 %v1697_v41 }
 0x1ab   : > { %v2216_v25 = vunpack.i.h.bf16 %v2994_v10 }
 0x1ac   : > { %v1460_v7 = vsel %vm1452_vm11, %v1447_v12, %v2406_v14  ;;  %v1459_v30 = vsel %vm1452_vm11, %v1446_v62, %v2405_v47 }
 0x1ad   : > { %v1473_v17 = vsel %vm1465_vm12, %v1460_v7, %v2396_v60  ;;  %v1472_v23 = vsel %vm1465_vm12, %v1459_v30, %v2395_v11  ;;  %v2419_v38 = vpop.permute.xlu0 %2418  ;;  %v2414_v28 = vpop.permute.xlu1 %2413 }
 0x1ae   : > { %v2416_v42 = vunpack.i.h.bf16 %v2414_v28  ;;  %v2415_v19 = vunpack.i.l.bf16 %v2414_v28  ;;  %v1485_v40 = vsel %vm1478_vm13, %v1472_v23, %v2410_v37  ;;  %v1486_v45 = vsel %vm1478_vm13, %v1473_v17, %v2411_v1 }
 0x1af   : > { %v1494_v16 = vpack.c.bf16 %v1486_v45, %v1485_v40  ;;  %v2421_v35 = vunpack.i.h.bf16 %v2419_v38  ;;  %v2420_v54 = vunpack.i.l.bf16 %v2419_v38 }
 0x1b0   : > { %v1426_v0 = vsel %vm1414_vm9, %v1413_v34, %v2416_v42  ;;  %v1425_v46 = vsel %vm1414_vm9, %v1412_v15, %v2415_v19  ;;  %v2044_v19 = vld [vmem:[%s3308_s7] ss:$0 sm:$0xff] }
 0x1b1   : > { %v2424_v59 = vpop.permute.xlu0 %2423  ;;  %v2429_v26 = vpop.permute.xlu1 %2428  ;;  %2133 = vmatmul.mubr.msk.bf16.gmra.mxu1 %vm1517_vm14, %v1494_v16  ;;  %v1437_v8 = vsel %vm618_vm1, %v1425_v46, %v2400_v32  ;;  %v1438_v31 = vsel %vm618_vm1, %v1426_v0, %v2401_v44  ;;  %v1449_v50 = vsel %vm1439_vm10, %v1436_v6, %v2421_v35  ;;  %v1448_v61 = vsel %vm1439_vm10, %v1435_v4, %v2420_v54 }
 0x1b2   : > { %v2431_v5 = vunpack.i.h.bf16 %v2429_v26  ;;  %v2430_v48 = vunpack.i.l.bf16 %v2429_v26  ;;  %v2426_v27 = vunpack.i.h.bf16 %v2424_v59  ;;  %v2425_v14 = vunpack.i.l.bf16 %v2424_v59 }
 0x1b4   : > { %v1451_v2 = vsel %vm1439_vm10, %v1438_v31, %v2431_v5  ;;  %v1450_v39 = vsel %vm1439_vm10, %v1437_v8, %v2430_v48 }
 0x1b5   : > { %v2434_v9 = vpop.permute.xlu0 %2433  ;;  %v2439_v13 = vpop.permute.xlu1 %2438 }
 0x1b6   : > { %v2436_v20 = vunpack.i.h.bf16 %v2434_v9  ;;  %v2435_v22 = vunpack.i.l.bf16 %v2434_v9  ;;  %v2441_v21 = vunpack.i.h.bf16 %v2439_v13  ;;  %v2440_v18 = vunpack.i.l.bf16 %v2439_v13 }
 0x1b8   : > { %v1462_v49 = vsel %vm1452_vm11, %v1449_v50, %v2436_v20  ;;  %v1461_v3 = vsel %vm1452_vm11, %v1448_v61, %v2435_v22  ;;  %v1464_v52 = vsel %vm1452_vm11, %v1451_v2, %v2441_v21  ;;  %v1463_v24 = vsel %vm1452_vm11, %v1450_v39, %v2440_v18 }
 0x1b9   : > { %v2444_v47 = vpop.permute.xlu0 %2443  ;;  %v2449_v62 = vpop.permute.xlu1 %2448  ;;  %v1474_v43 = vsel %vm1465_vm12, %v1461_v3, %v2425_v14  ;;  %v1475_v7 = vsel %vm1465_vm12, %v1462_v49, %v2426_v27  ;;  %v1476_v30 = vsel %vm1465_vm12, %v1463_v24, %v2215_v56  ;;  %v1477_v1 = vsel %vm1465_vm12, %v1464_v52, %v2216_v25 }
 0x1ba   : > { %v2446_v12 = vunpack.i.h.bf16 %v2444_v47  ;;  %v2445_v60 = vunpack.i.l.bf16 %v2444_v47  ;;  %v2451_v11 = vunpack.i.h.bf16 %v2449_v62  ;;  %v2450_v58 = vunpack.i.l.bf16 %v2449_v62 }
 0x1bc   : > { %v1487_v37 = vsel %vm1478_vm13, %v1474_v43, %v2445_v60  ;;  %v1488_v10 = vsel %vm1478_vm13, %v1475_v7, %v2446_v12  ;;  %v1489_v17 = vsel %vm1478_vm13, %v1476_v30, %v2450_v58  ;;  %v1490_v23 = vsel %vm1478_vm13, %v1477_v1, %v2451_v11 }
 0x1bd   : > { %v1495_v38 = vpack.c.bf16 %v1488_v10, %v1487_v37  ;;  %v1496_v28 = vpack.c.bf16 %v1490_v23, %v1489_v17  ;;  %v3212_v37 = vld [vmem:[%s3311_s10] ss:$0 sm:$0xff] }
 0x1be   : > { %v3217_v17 = vld [vmem:[%s3312_s11] ss:$0 sm:$0xff] }
 0x1bf   : > { %2136 = vmatprep.mubr.msk.bf16.mxu1 %vm1517_vm14, %v1495_v38 }
 0x1c0   : > { %2137 = vmatmul.mubr.msk.bf16.gmra.mxu1 %vm1517_vm14, %v1496_v28 }
 0x257   : > { %v2130_v42 = vpop.f32.mrf.mxu1 }
 0x258   : > { %v1630_v40 = vmul.f32 %v2130_v42, %v2044_v19  ;;  %v2456_v42 = vld [vmem:[%s2636_s24 + $0x10] sm:$0xff] }
 0x259   : > { %v1574_v29 = vpop.f32.mrf.mxu1 }
 0x25a   : > { %v1628_v36 = vmul.f32 %v2044_v19, %v1574_v29  ;;  %v1649_v32 = vadd.f32 %v2045_v53, %v1630_v40 }
 0x25b   : > { %v2131_v45 = vpop.f32.mrf.mxu1 }
 0x25c   : > { %v1631_v55 = vmul.f32 %v2131_v45, %v2044_v19  ;;  %v1647_v34 = vadd.f32 %v2045_v53, %v1628_v36  ;;  %v1661_v63 = vmax.f32 %v1649_v32, 0.0 }
 0x25d   : > { %v1577_v57 = vpop.f32.mrf.mxu1 }
 0x25e   : > { %v1650_v15 = vadd.f32 %v2045_v53, %v1631_v55  ;;  %v1629_v44 = vmul.f32 %v2044_v19, %v1577_v57  ;;  %v1659_v26 = vmax.f32 %v1647_v34, 0.0 }
 0x260   : > { %v1648_v16 = vadd.f32 %v2045_v53, %v1629_v44  ;;  %v1662_v59 = vmax.f32 %v1650_v15, 0.0  ;;  %v2458_v44 = vld [vmem:[%s2636_s24 + $0x18] sm:$0xff] }
 0x262   : > { %v1660_v51 = vmax.f32 %v1648_v16, 0.0  ;;  %v1672_v46 = vpack.c.bf16 %v1662_v59, %v1661_v63 }
 0x264   : > { %v1671_v0 = vpack.c.bf16 %v1660_v51, %v1659_v26  ;;  %v2459_v26 = vld [vmem:[%s2636_s24 + $0x8] sm:$0xff] }
 0x266   : > { %2142 = vmatprep.mubr.msk.bf16.mxu1 %vm1388_vm7, %v1671_v0 }
 0x267   : > { %2143 = vmatmul.mubr.msk.bf16.vlgmr.msra.gmra.mxu1 %vm1388_vm7, %v1672_v46 }
 0x271   : > { %v2134_v35 = vpop.f32.mrf.mxu1 }
 0x272   : > { %v1634_v48 = vmul.f32 %v2134_v35, %v2044_v19 }
 0x273   : > { %v1590_v54 = vpop.f32.mrf.mxu1 }
 0x274   : > { %v1632_v5 = vmul.f32 %v2044_v19, %v1590_v54  ;;  %v1653_v20 = vadd.f32 %v2045_v53, %v1634_v48 }
 0x275   : > { %v2135_v4 = vpop.f32.mrf.mxu1 }
 0x276   : > { %v1635_v6 = vmul.f32 %v2135_v4, %v2044_v19  ;;  %v1651_v31 = vadd.f32 %v2045_v53, %v1632_v5  ;;  %v1665_v61 = vmax.f32 %v1653_v20, 0.0  ;;  %v2460_v4 = vld [vmem:[%s2636_s24 + $0x30] sm:$0xff]  ;;  %v2461_v20 = vld [vmem:[%s2636_s24 + $0x20] sm:$0xff] }
 0x277   : > { %v1593_v8 = vpop.f32.mrf.mxu1 }
 0x278   : > { %v1654_v9 = vadd.f32 %v2045_v53, %v1635_v6  ;;  %v1633_v13 = vmul.f32 %v2044_v19, %v1593_v8  ;;  %v1663_v18 = vmax.f32 %v1651_v31, 0.0 }
 0x27a   : > { %v1652_v22 = vadd.f32 %v2045_v53, %v1633_v13  ;;  %v1666_v21 = vmax.f32 %v1654_v9, 0.0 }
 0x27c   : > { %v1664_v50 = vmax.f32 %v1652_v22, 0.0  ;;  %v1674_v49 = vpack.c.bf16 %v1666_v21, %v1665_v61  ;;  %v2462_v61 = vld [vmem:[%s2636_s24 + $0x38] sm:$0xff] }
 0x27e   : > { %v1673_v2 = vpack.c.bf16 %v1664_v50, %v1663_v18 }
 0x280   : > { %v2138_v39 = vpop.f32.mrf.mxu1  ;;  %2146 = vmatprep.mubr.msk.bf16.mxu1 %vm1388_vm7, %v1673_v2 }
 0x281   : > { %2147 = vmatmul.mubr.msk.bf16.gmra.mxu1 %vm1388_vm7, %v1674_v49  ;;  %v1638_v24 = vmul.f32 %v2138_v39, %v2044_v19 }
 0x282   : > { %v1606_v3 = vpop.f32.mrf.mxu1 }
 0x283   : > { %v1636_v52 = vmul.f32 %v2044_v19, %v1606_v3  ;;  %v1657_v12 = vadd.f32 %v2045_v53, %v1638_v24  ;;  %v2463_v3 = vld [vmem:[%s2636_s24 + $0x28] sm:$0xff] }
 0x284   : > { %v2139_v25 = vpop.f32.mrf.mxu1 }
 0x285   : > { %v1639_v56 = vmul.f32 %v2139_v25, %v2044_v19  ;;  %v1655_v14 = vadd.f32 %v2045_v53, %v1636_v52  ;;  %v1669_v7 = vmax.f32 %v1657_v12, 0.0  ;;  %v2464_v12 = vld [vmem:[%s2636_s24 + $0x50] sm:$0xff] }
 0x286   : > { %v1609_v27 = vpop.f32.mrf.mxu1 }
 0x287   : > { %v1658_v47 = vadd.f32 %v2045_v53, %v1639_v56  ;;  %v1637_v62 = vmul.f32 %v2044_v19, %v1609_v27  ;;  %v1667_v58 = vmax.f32 %v1655_v14, 0.0 }
 0x289   : > { %v1656_v60 = vadd.f32 %v2045_v53, %v1637_v62  ;;  %v1670_v11 = vmax.f32 %v1658_v47, 0.0  ;;  %v2457_v53 = vld [vmem:[%s2636_s24] sm:$0xff] }
 0x28b   : > { %v1668_v43 = vmax.f32 %v1656_v60, 0.0  ;;  %v1676_v1 = vpack.c.bf16 %v1670_v11, %v1669_v7 }
 0x28d   : > { %v1675_v30 = vpack.c.bf16 %v1668_v43, %v1667_v58 }
 0x28f   : > { %2150 = vmatprep.mubr.msk.bf16.mxu1 %vm1388_vm7, %v1675_v30  ;;  %v2465_v30 = vld [vmem:[%s2636_s24 + $0x40] sm:$0xff] }
 0x290   : > { %2151 = vmatmul.mubr.msk.bf16.gmra.mxu1 %vm1388_vm7, %v1676_v1 }
 0x327   : > { %v2144_v10 = vpop.f32.mrf.mxu1 }
 0x328   : > { %v1789_v23 = vmul.f32 %v2144_v10, %v3212_v37 }
 0x329   : > { %v1733_v38 = vpop.f32.mrf.mxu1 }
 0x32a   : > { %v1808_v28 = vadd.f32 %v3217_v17, %v1789_v23  ;;  %v1787_v33 = vmul.f32 %v3212_v37, %v1733_v38 }
 0x32b   : > { %v2145_v41 = vpop.f32.mrf.mxu1 }
 0x32c   : > { %v1820_v19 = vadd.f32 %v2456_v42, %v1808_v28  ;;  %v1806_v29 = vadd.f32 %v3217_v17, %v1787_v33  ;;  %v1790_v36 = vmul.f32 %v2145_v41, %v3212_v37  ;;  %v2466_v28 = vld [vmem:[%s2636_s24 + $0x58] sm:$0xff] }
 0x32d   : > { %v1736_v40 = vpop.f32.mrf.mxu1 }
 0x32e   : > { %v1832_v45 = vmax.f32 %v1820_v19, 0.0  ;;  %v1818_v55 = vadd.f32 %v2457_v53, %v1806_v29  ;;  %v1809_v57 = vadd.f32 %v3217_v17, %v1790_v36  ;;  %v1788_v34 = vmul.f32 %v3212_v37, %v1736_v40  ;;  %v2467_v19 = vld [vmem:[%s2636_s24 + $0x48] sm:$0xff] }
 0x330   : > { %1844 = vst.msk [vmem:[%s3230_s29 + $0x10] sm:$0xff] %vm618_vm1, %v1832_v45  ;;  %v1830_v15 = vmax.f32 %v1818_v55, 0.0  ;;  %v1821_v32 = vadd.f32 %v2458_v44, %v1809_v57  ;;  %v1807_v16 = vadd.f32 %v3217_v17, %v1788_v34 }
 0x332   : > { %1842 = vst.msk [vmem:[%s3230_s29] sm:$0xff] %vm618_vm1, %v1830_v15  ;;  %v1833_v59 = vmax.f32 %v1821_v32, 0.0  ;;  %v1819_v51 = vadd.f32 %v2459_v26, %v1807_v16 }
 0x334   : > { %1845 = vst.msk [vmem:[%s3230_s29 + $0x18] sm:$0xff] %vm618_vm1, %v1833_v59  ;;  %v1831_v63 = vmax.f32 %v1819_v51, 0.0 }
 0x336   : > { %1843 = vst.msk [vmem:[%s3230_s29 + $0x8] sm:$0xff] %vm618_vm1, %v1831_v63 }
 0x341   : > { %v2148_v0 = vpop.f32.mrf.mxu1 }
 0x342   : > { %v1793_v46 = vmul.f32 %v2148_v0, %v3212_v37 }
 0x343   : > { %v1749_v35 = vpop.f32.mrf.mxu1 }
 0x344   : > { %v1812_v54 = vadd.f32 %v3217_v17, %v1793_v46  ;;  %v1791_v5 = vmul.f32 %v3212_v37, %v1749_v35 }
 0x345   : > { %v2149_v48 = vpop.f32.mrf.mxu1 }
 0x346   : > { %v1824_v6 = vadd.f32 %v2460_v4, %v1812_v54  ;;  %v1810_v8 = vadd.f32 %v3217_v17, %v1791_v5  ;;  %v1794_v31 = vmul.f32 %v2149_v48, %v3212_v37 }
 0x347   : > { %v1752_v9 = vpop.f32.mrf.mxu1 }
 0x348   : > { %v1836_v13 = vmax.f32 %v1824_v6, 0.0  ;;  %v1822_v22 = vadd.f32 %v2461_v20, %v1810_v8  ;;  %v1813_v21 = vadd.f32 %v3217_v17, %v1794_v31  ;;  %v1792_v18 = vmul.f32 %v3212_v37, %v1752_v9 }
 0x34a   : > { %1848 = vst.msk [vmem:[%s3230_s29 + $0x30] sm:$0xff] %vm618_vm1, %v1836_v13  ;;  %v1834_v50 = vmax.f32 %v1822_v22, 0.0  ;;  %v1825_v2 = vadd.f32 %v2462_v61, %v1813_v21  ;;  %v1811_v39 = vadd.f32 %v3217_v17, %v1792_v18 }
 0x34c   : > { %1846 = vst.msk [vmem:[%s3230_s29 + $0x20] sm:$0xff] %vm618_vm1, %v1834_v50  ;;  %v1837_v49 = vmax.f32 %v1825_v2, 0.0  ;;  %v1823_v52 = vadd.f32 %v2463_v3, %v1811_v39 }
 0x34e   : > { %1849 = vst.msk [vmem:[%s3230_s29 + $0x38] sm:$0xff] %vm618_vm1, %v1837_v49  ;;  %v1835_v24 = vmax.f32 %v1823_v52, 0.0 }
 0x350   : > { %v2152_v25 = vpop.f32.mrf.mxu1  ;;  %1847 = vst.msk [vmem:[%s3230_s29 + $0x28] sm:$0xff] %vm618_vm1, %v1835_v24 }
 0x351   : > { %v1797_v56 = vmul.f32 %v2152_v25, %v3212_v37 }
 0x352   : > { %v1765_v27 = vpop.f32.mrf.mxu1 }
 0x353   : > { %v1816_v14 = vadd.f32 %v3217_v17, %v1797_v56  ;;  %v1795_v47 = vmul.f32 %v3212_v37, %v1765_v27 }
 0x354   : > { %v2153_v62 = vpop.f32.mrf.mxu1 }
 0x355   : > { %v1828_v60 = vadd.f32 %v2464_v12, %v1816_v14  ;;  %v1814_v11 = vadd.f32 %v3217_v17, %v1795_v47  ;;  %v1798_v58 = vmul.f32 %v2153_v62, %v3212_v37 }
 0x356   : > { %v1768_v43 = vpop.f32.mrf.mxu1 }
 0x357   : > { %v1840_v7 = vmax.f32 %v1828_v60, 0.0  ;;  %v1826_v1 = vadd.f32 %v2465_v30, %v1814_v11  ;;  %v1817_v10 = vadd.f32 %v3217_v17, %v1798_v58  ;;  %v1796_v23 = vmul.f32 %v3212_v37, %v1768_v43 }
 0x359   : > { %1852 = vst.msk [vmem:[%s3230_s29 + $0x50] sm:$0xff] %vm618_vm1, %v1840_v7  ;;  %v1838_v38 = vmax.f32 %v1826_v1, 0.0  ;;  %v1829_v33 = vadd.f32 %v2466_v28, %v1817_v10  ;;  %v1815_v41 = vadd.f32 %v3217_v17, %v1796_v23 }
 0x35b   : > { %1850 = vst.msk [vmem:[%s3230_s29 + $0x40] sm:$0xff] %vm618_vm1, %v1838_v38  ;;  %v1841_v42 = vmax.f32 %v1829_v33, 0.0  ;;  %v1827_v29 = vadd.f32 %v2467_v19, %v1815_v41 }
 0x35d   : > { %1853 = vst.msk [vmem:[%s3230_s29 + $0x58] sm:$0xff] %vm618_vm1, %v1841_v42  ;;  %v1839_v36 = vmax.f32 %v1827_v29, 0.0 }
 0x35f   : > { %1851 = vst.msk [vmem:[%s3230_s29 + $0x48] sm:$0xff] %vm618_vm1, %v1839_v36 }
 0x360 PF: > { %s22_s25 = sadd.s32 1, %s2506_s25   ;;  %s3324_s22 = sld [smem:[#allocation2_spill]] }
 0x361   : > { %p19_p12 = scmp.ge.s32.totalorder %s22_s25, 10   ;;  %s3325_s18 = sld [smem:[#allocation3_spill]] }
 0x362   : > { %s3326_s24 = sld [smem:[#allocation4_spill]]  ;;  %s3327_s21 = smov %s2498_s23 }
 0x363   :  { %21 = sbr.rel (!%p19_p12) target bundleno = 3 (0x3), region = 104 }
 0x367   : > { %s3328_s23 = smov %s3325_s18 }

</bundles_post_ra>
